<compile_context>
chip_gen: v7x
topology: tpu7x:2x2x1
jax: 0.10.0
libtpu: 0.0.40
codegen_flags: <defaults>
</compile_context>

<pallas_src>
import functools

import jax
import jax.numpy as jnp
from jax.experimental import pallas as pl
from jax.experimental.pallas import tpu as pltpu

BN_EPS = 1e-5


# --------------------------- small helpers -----------------------------------

def _padded_flat_len(s, width):
    # Flat (row-major) image padded by W+1 zeros on each side: every 3x3 tap at
    # output flat index m reads padded index m + i*W + j (constant shift per tap).
    # Rounded up to a lane multiple for friendly layouts.
    return ((s + 2 * width + 2 + 127) // 128) * 128


def _pad_flat(x_flat, width, sp2):
    n, c, s = x_flat.shape
    lead = width + 1
    return jnp.pad(x_flat, ((0, 0), (0, 0), (lead, sp2 - s - lead)))


def _col_masks(width, s):
    # left mask kills j=0 taps at wo==0 (they would wrap to the previous row's
    # last pixel); right mask kills j=2 taps at wo==W-1.  All other out-of-range
    # taps land in genuine zero padding of the flat slab.
    wo = jnp.arange(s, dtype=jnp.int32) % width
    left = (wo != 0).astype(jnp.float32)
    right = (wo != width - 1).astype(jnp.float32)
    return jnp.stack([left, right], axis=0)            # (2, S)


def _conv_taps(w):
    # (Cout, Cin, 3, 3) -> (9, Cout, Cin) bf16, tap index = i*3 + j.
    cout, cin = w.shape[:2]
    return jnp.transpose(w, (2, 3, 0, 1)).reshape(9, cout, cin).astype(jnp.bfloat16)


def _fold_pixelshuffle_into_conv4x4(w4):
    # Exact identity: 4x4 stride-2 pad-1 conv on the r=2 pixel-shuffled image
    # == 3x3 stride-1 pad-1 conv on the pre-shuffle (4*Cin)-channel tensor.
    # up-row = 2*ho - 1 + ky = 2*(ho + ry - 1) + dy  ->  ky -> (ry, dy).
    cout, cin = w4.shape[:2]
    kmap = ((0, 1), (1, 0), (1, 1), (2, 0))
    w3 = jnp.zeros((cout, 4 * cin, 3, 3), w4.dtype)
    for ky, (ry, dy) in enumerate(kmap):
        for kx, (rx, dx) in enumerate(kmap):
            sub = dy * 2 + dx                           # PixelShuffle channel order
            w3 = w3.at[:, sub::4, ry, rx].set(w4[:, :, ky, kx])
    return w3


def _compiler_params(block_bytes):
    # Explicit scoped-VMEM limit: v5e default is 16 MiB, v7x physical is 64 MiB.
    limit = int(min(48 << 20, max(16 << 20, 4 * int(block_bytes))))
    return pltpu.CompilerParams(dimension_semantics=("parallel",),
                                vmem_limit_bytes=limit)


# --------------------------- Pallas kernels ----------------------------------

def _conv_taps_epilogue(w_ref, mask_ref, bias_ref, xp_ref, y_ref, sum_ref, sq_ref,
                        width):
    """9 shifted matmuls (in-kernel im2col) + bias + BN-partial epilogue."""
    cout, s = y_ref.shape[1], y_ref.shape[2]
    accs = []
    for j in range(3):
        acc = jnp.zeros((cout, s), jnp.float32)
        for i in range(3):
            start = i * width + j                       # constant flat shift per tap
            slab = xp_ref[0, :, start:start + s]        # (Cin, S) bf16, no im2col copy
            acc = acc + jnp.dot(w_ref[i * 3 + j], slab,
                                preferred_element_type=jnp.float32)
        accs.append(acc)
    left = mask_ref[0:1, :]                             # (1, S)
    right = mask_ref[1:2, :]
    y = accs[1] + left * accs[0] + right * accs[2] + bias_ref[...]
    # Per-image BN partial statistics from the f32 accumulator (reduced in XLA;
    # keeps this grid axis "parallel" so v7x can use both TensorCores).
    sum_ref[0] = jnp.sum(y, axis=1, keepdims=True)
    sq_ref[0] = jnp.sum(y * y, axis=1, keepdims=True)
    y_ref[0] = y.astype(y_ref.dtype)                    # bf16 out: halves Y HBM traffic


def _conv_stats_kernel(width, w_ref, mask_ref, bias_ref, xp_ref,
                       y_ref, sum_ref, sq_ref):
    _conv_taps_epilogue(w_ref, mask_ref, bias_ref, xp_ref,
                        y_ref, sum_ref, sq_ref, width)


def _conv_stats_fused_kernel(width, res_sign, has_res, *refs):
    # BN-apply + ReLU (+ residual) of the previous block fused into this conv's
    # input read; the padded activation is built in a VMEM scratch so the
    # post-BN intermediate never round-trips through HBM.
    if has_res:
        (w_ref, mask_ref, bias_ref, yp_ref, scale_ref, shift_ref, res_ref,
         y_ref, sum_ref, sq_ref, xp_ref) = refs
    else:
        (w_ref, mask_ref, bias_ref, yp_ref, scale_ref, shift_ref,
         y_ref, sum_ref, sq_ref, xp_ref) = refs
        res_ref = None
    a = jnp.maximum(yp_ref[0].astype(jnp.float32) * scale_ref[...]
                    + shift_ref[...], 0.0)
    if res_ref is not None:
        a = a + res_sign * res_ref[0].astype(jnp.float32)
    lead = width + 1
    s = a.shape[-1]
    xp_ref[...] = jnp.zeros(xp_ref.shape, xp_ref.dtype)
    xp_ref[0, :, lead:lead + s] = a.astype(xp_ref.dtype)
    _conv_taps_epilogue(w_ref, mask_ref, bias_ref, xp_ref,
                        y_ref, sum_ref, sq_ref, width)


def _final_apply_kernel(y3_ref, sc3_ref, sh3_ref, y1_ref, sc1_ref, sh1_ref, o_ref):
    # out_pre = relu(bn3(y3)) + relu(bn1(y1))   (h0_pre recomputed from y1;
    # cheaper than materialising it just for the final residual).
    h1 = jnp.maximum(y3_ref[0].astype(jnp.float32) * sc3_ref[...] + sh3_ref[...], 0.0)
    h0 = jnp.maximum(y1_ref[0].astype(jnp.float32) * sc1_ref[...] + sh1_ref[...], 0.0)
    o_ref[0] = (h0 + h1).astype(o_ref.dtype)


# --------------------------- Pallas wrappers ----------------------------------

def conv_stats(xp, w_taps, bias, masks, width):
    """Plain 3x3 s1 p1 conv (+bias) on a pre-padded bf16 input; bf16 Y + BN partials."""
    n, cin, sp2 = xp.shape
    _, cout, _ = w_taps.shape
    s = masks.shape[1]
    bytes_est = (w_taps.size * 2 + masks.size * 4 + bias.size * 4
                 + cin * sp2 * 2 + cout * s * 2 + 2 * cout * 4)
    return pl.pallas_call(
        functools.partial(_conv_stats_kernel, width),
        out_shape=(jax.ShapeDtypeStruct((n, cout, s), jnp.bfloat16),
                   jax.ShapeDtypeStruct((n, cout, 1), jnp.float32),
                   jax.ShapeDtypeStruct((n, cout, 1), jnp.float32)),
        grid=(n,),
        in_specs=[pl.BlockSpec((9, cout, cin), lambda i: (0, 0, 0)),
                  pl.BlockSpec((2, s), lambda i: (0, 0)),
                  pl.BlockSpec((cout, 1), lambda i: (0, 0)),
                  pl.BlockSpec((1, cin, sp2), lambda i: (i, 0, 0))],
        out_specs=(pl.BlockSpec((1, cout, s), lambda i: (i, 0, 0)),
                   pl.BlockSpec((1, cout, 1), lambda i: (i, 0, 0)),
                   pl.BlockSpec((1, cout, 1), lambda i: (i, 0, 0))),
        compiler_params=_compiler_params(bytes_est),
    )(w_taps, masks, bias, xp)


def conv_stats_fused(y_prev, scale, shift, w_taps, bias, masks, width,
                     residual=None, res_sign=1.0):
    """relu(bn(y_prev)) [+ sign*res] -> pad (VMEM) -> 3x3 conv (+bias) -> bf16 Y + partials."""
    n, cin, s = y_prev.shape
    _, cout, _ = w_taps.shape
    sp2 = _padded_flat_len(s, width)
    has_res = residual is not None
    bytes_est = (w_taps.size * 2 + masks.size * 4 + bias.size * 4
                 + cin * s * 2 + 2 * cin * 4 + cin * sp2 * 2
                 + cout * s * 2 + 2 * cout * 4
                 + (cin * s * 4 if has_res else 0))
    in_specs = [pl.BlockSpec((9, cout, cin), lambda i: (0, 0, 0)),
                pl.BlockSpec((2, s), lambda i: (0, 0)),
                pl.BlockSpec((cout, 1), lambda i: (0, 0)),
                pl.BlockSpec((1, cin, s), lambda i: (i, 0, 0)),
                pl.BlockSpec((cin, 1), lambda i: (0, 0)),
                pl.BlockSpec((cin, 1), lambda i: (0, 0))]
    args = [w_taps, masks, bias, y_prev, scale, shift]
    if has_res:
        in_specs.append(pl.BlockSpec((1, cin, s), lambda i: (i, 0, 0)))
        args.append(residual)
    return pl.pallas_call(
        functools.partial(_conv_stats_fused_kernel, width, float(res_sign), has_res),
        out_shape=(jax.ShapeDtypeStruct((n, cout, s), jnp.bfloat16),
                   jax.ShapeDtypeStruct((n, cout, 1), jnp.float32),
                   jax.ShapeDtypeStruct((n, cout, 1), jnp.float32)),
        grid=(n,),
        in_specs=in_specs,
        out_specs=(pl.BlockSpec((1, cout, s), lambda i: (i, 0, 0)),
                   pl.BlockSpec((1, cout, 1), lambda i: (i, 0, 0)),
                   pl.BlockSpec((1, cout, 1), lambda i: (i, 0, 0))),
        scratch_shapes=[pltpu.VMEM((1, cin, sp2), jnp.bfloat16)],
        compiler_params=_compiler_params(bytes_est),
    )(*args)


def final_apply(y3, scale3, shift3, y1, scale1, shift1):
    n, c, s = y3.shape
    bytes_est = 2 * c * s * 2 + c * s * 4 + 4 * c * 4
    spec_y = pl.BlockSpec((1, c, s), lambda i: (i, 0, 0))
    spec_v = pl.BlockSpec((c, 1), lambda i: (0, 0))
    return pl.pallas_call(
        _final_apply_kernel,
        out_shape=jax.ShapeDtypeStruct((n, c, s), jnp.float32),
        grid=(n,),
        in_specs=[spec_y, spec_v, spec_v, spec_y, spec_v, spec_v],
        out_specs=spec_y,
        compiler_params=_compiler_params(bytes_est),
    )(y3, scale3, shift3, y1, scale1, shift1)


# --------------------------- glue (tiny XLA) ----------------------------------

def _bn_scale_shift(sums, sqs, gamma, beta, count, group):
    """Reduce per-image BN partials; group `group` conv channels per BN channel
    (PixelShuffle pools 4 pre-shuffle channels per BN channel)."""
    s = jnp.sum(sums, axis=0)[:, 0]
    q = jnp.sum(sqs, axis=0)[:, 0]
    s = s.reshape(-1, group).sum(axis=1)
    q = q.reshape(-1, group).sum(axis=1)
    mean = s / count
    var = jnp.maximum(q / count - mean * mean, 0.0)     # clamp: cancellation guard
    scale = gamma / jnp.sqrt(var + BN_EPS)
    shift = beta - mean * scale
    scale = jnp.repeat(scale, group).reshape(-1, 1).astype(jnp.float32)
    shift = jnp.repeat(shift, group).reshape(-1, 1).astype(jnp.float32)
    return scale, shift


def db_upsample(x_nchw, params):
    n, cin, h, w = x_nchw.shape
    ngf = params["up1"]["gamma"].shape[0]
    s = h * w
    sp2 = _padded_flat_len(s, w)
    masks = _col_masks(w, s)
    x_flat = x_nchw.reshape(n, cin, s)                              # (N, Cin, S) f32

    # --- up1: conv3x3 -> (PixelShuffle) -> BN(train) -> ReLU -----------------
    p = params["up1"]
    xp = _pad_flat(x_flat.astype(jnp.bfloat16), w, sp2)             # bf16 input, one pad
    y1, sm1, sq1 = conv_stats(xp, _conv_taps(p["w"]),
                              p["b"].reshape(-1, 1).astype(jnp.float32), masks, w)
    sc1, sh1 = _bn_scale_shift(sm1, sq1, p["gamma"], p["beta"],
                               count=float(n * s * 4), group=4)

    # --- down1: conv4x4 s2 on shuffled h0 == folded conv3x3 on h0_pre --------
    #     (BN1-apply + ReLU fused into the input read; h0 never materialised)
    p = params["down1"]
    w_down = _conv_taps(_fold_pixelshuffle_into_conv4x4(p["w"]))
    y2, sm2, sq2 = conv_stats_fused(y1, sc1, sh1, w_down,
                                    p["b"].reshape(-1, 1).astype(jnp.float32),
                                    masks, w)
    sc2, sh2 = _bn_scale_shift(sm2, sq2, p["gamma"], p["beta"],
                               count=float(n * s), group=1)

    # --- up2 on d = relu(bn2(y2)) - x   (apply + residual fused in-kernel) ---
    p = params["up2"]
    y3, sm3, sq3 = conv_stats_fused(y2, sc2, sh2, _conv_taps(p["w"]),
                                    p["b"].reshape(-1, 1).astype(jnp.float32),
                                    masks, w, residual=x_flat, res_sign=-1.0)
    sc3, sh3 = _bn_scale_shift(sm3, sq3, p["gamma"], p["beta"],
                               count=float(n * s * 4), group=4)

    # --- out_pre = relu(bn3(y3)) + relu(bn1(y1)) = h1_pre + h0_pre -----------
    out_pre = final_apply(y3, sc3, sh3, y1, sc1, sh1)               # (N, 4ngf, S) f32

    # Single XLA PixelShuffle(2) + reshape to NCHW.
    out = (out_pre.reshape(n, ngf, 2, 2, h, w)
                  .transpose(0, 1, 4, 2, 5, 3)
                  .reshape(n, ngf, 2 * h, 2 * w))
    return out


# --------------------------- parameter init ----------------------------------

def init_params(key, in_channel, out_channel):
    ngf = out_channel
    ks = jax.random.split(key, 6)

    def conv_params(kw, kb, cout, cin, kh, kw_):
        w = 0.1 * jax.random.normal(kw, (cout, cin, kh, kw_), jnp.float32)
        b = 0.05 * jax.random.normal(kb, (cout,), jnp.float32)
        return w, b

    def bn_params(c):
        return jnp.ones((c,), jnp.float32), jnp.zeros((c,), jnp.float32)

    w1, b1 = conv_params(ks[0], ks[1], ngf * 4, in_channel, 3, 3)
    w2, b2 = conv_params(ks[2], ks[3], ngf, ngf, 4, 4)
    w3, b3 = conv_params(ks[4], ks[5], ngf * 4, ngf, 3, 3)
    g1, be1 = bn_params(ngf)
    g2, be2 = bn_params(ngf)
    g3, be3 = bn_params(ngf)
    return {
        "up1":   {"w": w1, "b": b1, "gamma": g1, "beta": be1},
        "down1": {"w": w2, "b": b2, "gamma": g2, "beta": be2},
        "up2":   {"w": w3, "b": b3, "gamma": g3, "beta": be3},
    }


# ------------------------------- main -----------------------------------------

if __name__ == "__main__":
    key = jax.random.PRNGKey(0)
    k_param, k_input = jax.random.split(key)

    # DBUpsample's residual (l0 - x) requires in_channel == out_channel.
    in_channel = out_channel = 4
    N, H, W = 2, 16, 16

    params = init_params(k_param, in_channel, out_channel)
    x = jax.random.normal(k_input, (N, in_channel, H, W), jnp.float32)

    out = jax.jit(db_upsample)(x, params)
    out = jax.block_until_ready(out)

    assert out.shape == (N, out_channel, 2 * H, 2 * W), out.shape
    assert bool(jnp.all(jnp.isfinite(out)))
    print("KERNEL_OK")
</pallas_src>

<mosaic_0001>
module attributes {stable_mosaic.version = 11 : i64} {
  func.func @_conv_stats_kernel(%arg0: i32, %arg1: memref<9x16x4xbf16, #tpu.memory_space<vmem>>, %arg2: memref<2x256xf32, #tpu.memory_space<vmem>>, %arg3: memref<16x1xf32, #tpu.memory_space<vmem>>, %arg4: memref<1x4x384xbf16, #tpu.memory_space<vmem>>, %arg5: memref<1x16x256xbf16, #tpu.memory_space<vmem>>, %arg6: memref<1x16x1xf32, #tpu.memory_space<vmem>>, %arg7: memref<1x16x1xf32, #tpu.memory_space<vmem>>) attributes {dimension_semantics = [#tpu.dimension_semantics<parallel>], iteration_bounds = array<i64: 2>, scalar_prefetch = 0 : i64, scratch_operands = 0 : i64, tpu.core_type = #tpu.core_type<tc>, window_params = [{pipeline_mode = #tpu.pipeline_mode<synchronous>, transform_indices = @transform_0, window_bounds = array<i64: 9, 16, 4>}, {pipeline_mode = #tpu.pipeline_mode<synchronous>, transform_indices = @transform_1, window_bounds = array<i64: 2, 256>}, {pipeline_mode = #tpu.pipeline_mode<synchronous>, transform_indices = @transform_2, window_bounds = array<i64: 16, 1>}, {transform_indices = @transform_3, window_bounds = array<i64: 1, 4, 384>}, {transform_indices = @transform_4, window_bounds = array<i64: 1, 16, 256>}, {transform_indices = @transform_5, window_bounds = array<i64: 1, 16, 1>}, {transform_indices = @transform_6, window_bounds = array<i64: 1, 16, 1>}]} {
    %cst = arith.constant 0.000000e+00 : f32
    %0 = vector.broadcast %cst : f32 to vector<16x256xf32>
    %c0 = arith.constant 0 : index
    %c0_0 = arith.constant 0 : index
    %c0_1 = arith.constant 0 : index
    %1 = vector.load %arg4[%c0, %c0_0, %c0_1] : memref<1x4x384xbf16, #tpu.memory_space<vmem>>, vector<1x4x256xbf16>
    %2 = vector.shape_cast %1 : vector<1x4x256xbf16> to vector<4x256xbf16>
    %c0_2 = arith.constant 0 : index
    %c0_3 = arith.constant 0 : index
    %c0_4 = arith.constant 0 : index
    %3 = vector.load %arg1[%c0_2, %c0_3, %c0_4] : memref<9x16x4xbf16, #tpu.memory_space<vmem>>, vector<1x16x4xbf16>
    %4 = vector.shape_cast %3 : vector<1x16x4xbf16> to vector<16x4xbf16>
    %cst_5 = arith.constant dense<0.000000e+00> : vector<16x256xf32>
    %5 = tpu.matmul %4, %2, %cst_5 {dimension_numbers = #tpu.dot_dimension_numbers<[1], [0], [0], [1], [0, 0, 1, 1], [], []>} : vector<16x4xbf16>, vector<4x256xbf16>, vector<16x256xf32> -> vector<16x256xf32>
    %6 = arith.addf %0, %5 : vector<16x256xf32>
    %c0_6 = arith.constant 0 : index
    %c0_7 = arith.constant 0 : index
    %c16 = arith.constant 16 : index
    %7 = vector.load %arg4[%c0_6, %c0_7, %c16] : memref<1x4x384xbf16, #tpu.memory_space<vmem>>, vector<1x4x256xbf16>
    %8 = vector.shape_cast %7 : vector<1x4x256xbf16> to vector<4x256xbf16>
    %c3 = arith.constant 3 : index
    %c0_8 = arith.constant 0 : index
    %c0_9 = arith.constant 0 : index
    %9 = vector.load %arg1[%c3, %c0_8, %c0_9] : memref<9x16x4xbf16, #tpu.memory_space<vmem>>, vector<1x16x4xbf16>
    %10 = vector.shape_cast %9 : vector<1x16x4xbf16> to vector<16x4xbf16>
    %cst_10 = arith.constant dense<0.000000e+00> : vector<16x256xf32>
    %11 = tpu.matmul %10, %8, %cst_10 {dimension_numbers = #tpu.dot_dimension_numbers<[1], [0], [0], [1], [0, 0, 1, 1], [], []>} : vector<16x4xbf16>, vector<4x256xbf16>, vector<16x256xf32> -> vector<16x256xf32>
    %12 = arith.addf %6, %11 : vector<16x256xf32>
    %c0_11 = arith.constant 0 : index
    %c0_12 = arith.constant 0 : index
    %c32 = arith.constant 32 : index
    %13 = vector.load %arg4[%c0_11, %c0_12, %c32] : memref<1x4x384xbf16, #tpu.memory_space<vmem>>, vector<1x4x256xbf16>
    %14 = vector.shape_cast %13 : vector<1x4x256xbf16> to vector<4x256xbf16>
    %c6 = arith.constant 6 : index
    %c0_13 = arith.constant 0 : index
    %c0_14 = arith.constant 0 : index
    %15 = vector.load %arg1[%c6, %c0_13, %c0_14] : memref<9x16x4xbf16, #tpu.memory_space<vmem>>, vector<1x16x4xbf16>
    %16 = vector.shape_cast %15 : vector<1x16x4xbf16> to vector<16x4xbf16>
    %cst_15 = arith.constant dense<0.000000e+00> : vector<16x256xf32>
    %17 = tpu.matmul %16, %14, %cst_15 {dimension_numbers = #tpu.dot_dimension_numbers<[1], [0], [0], [1], [0, 0, 1, 1], [], []>} : vector<16x4xbf16>, vector<4x256xbf16>, vector<16x256xf32> -> vector<16x256xf32>
    %18 = arith.addf %12, %17 : vector<16x256xf32>
    %cst_16 = arith.constant 0.000000e+00 : f32
    %19 = vector.broadcast %cst_16 : f32 to vector<16x256xf32>
    %c0_17 = arith.constant 0 : index
    %c0_18 = arith.constant 0 : index
    %c1 = arith.constant 1 : index
    %20 = vector.load %arg4[%c0_17, %c0_18, %c1] : memref<1x4x384xbf16, #tpu.memory_space<vmem>>, vector<1x4x256xbf16>
    %21 = vector.shape_cast %20 : vector<1x4x256xbf16> to vector<4x256xbf16>
    %c1_19 = arith.constant 1 : index
    %c0_20 = arith.constant 0 : index
    %c0_21 = arith.constant 0 : index
    %22 = vector.load %arg1[%c1_19, %c0_20, %c0_21] : memref<9x16x4xbf16, #tpu.memory_space<vmem>>, vector<1x16x4xbf16>
    %23 = vector.shape_cast %22 : vector<1x16x4xbf16> to vector<16x4xbf16>
    %cst_22 = arith.constant dense<0.000000e+00> : vector<16x256xf32>
    %24 = tpu.matmul %23, %21, %cst_22 {dimension_numbers = #tpu.dot_dimension_numbers<[1], [0], [0], [1], [0, 0, 1, 1], [], []>} : vector<16x4xbf16>, vector<4x256xbf16>, vector<16x256xf32> -> vector<16x256xf32>
    %25 = arith.addf %19, %24 : vector<16x256xf32>
    %c0_23 = arith.constant 0 : index
    %c0_24 = arith.constant 0 : index
    %c17 = arith.constant 17 : index
    %26 = vector.load %arg4[%c0_23, %c0_24, %c17] : memref<1x4x384xbf16, #tpu.memory_space<vmem>>, vector<1x4x256xbf16>
    %27 = vector.shape_cast %26 : vector<1x4x256xbf16> to vector<4x256xbf16>
    %c4 = arith.constant 4 : index
    %c0_25 = arith.constant 0 : index
    %c0_26 = arith.constant 0 : index
    %28 = vector.load %arg1[%c4, %c0_25, %c0_26] : memref<9x16x4xbf16, #tpu.memory_space<vmem>>, vector<1x16x4xbf16>
    %29 = vector.shape_cast %28 : vector<1x16x4xbf16> to vector<16x4xbf16>
    %cst_27 = arith.constant dense<0.000000e+00> : vector<16x256xf32>
    %30 = tpu.matmul %29, %27, %cst_27 {dimension_numbers = #tpu.dot_dimension_numbers<[1], [0], [0], [1], [0, 0, 1, 1], [], []>} : vector<16x4xbf16>, vector<4x256xbf16>, vector<16x256xf32> -> vector<16x256xf32>
    %31 = arith.addf %25, %30 : vector<16x256xf32>
    %c0_28 = arith.constant 0 : index
    %c0_29 = arith.constant 0 : index
    %c33 = arith.constant 33 : index
    %32 = vector.load %arg4[%c0_28, %c0_29, %c33] : memref<1x4x384xbf16, #tpu.memory_space<vmem>>, vector<1x4x256xbf16>
    %33 = vector.shape_cast %32 : vector<1x4x256xbf16> to vector<4x256xbf16>
    %c7 = arith.constant 7 : index
    %c0_30 = arith.constant 0 : index
    %c0_31 = arith.constant 0 : index
    %34 = vector.load %arg1[%c7, %c0_30, %c0_31] : memref<9x16x4xbf16, #tpu.memory_space<vmem>>, vector<1x16x4xbf16>
    %35 = vector.shape_cast %34 : vector<1x16x4xbf16> to vector<16x4xbf16>
    %cst_32 = arith.constant dense<0.000000e+00> : vector<16x256xf32>
    %36 = tpu.matmul %35, %33, %cst_32 {dimension_numbers = #tpu.dot_dimension_numbers<[1], [0], [0], [1], [0, 0, 1, 1], [], []>} : vector<16x4xbf16>, vector<4x256xbf16>, vector<16x256xf32> -> vector<16x256xf32>
    %37 = arith.addf %31, %36 : vector<16x256xf32>
    %cst_33 = arith.constant 0.000000e+00 : f32
    %38 = vector.broadcast %cst_33 : f32 to vector<16x256xf32>
    %c0_34 = arith.constant 0 : index
    %c0_35 = arith.constant 0 : index
    %c2 = arith.constant 2 : index
    %39 = vector.load %arg4[%c0_34, %c0_35, %c2] : memref<1x4x384xbf16, #tpu.memory_space<vmem>>, vector<1x4x256xbf16>
    %40 = vector.shape_cast %39 : vector<1x4x256xbf16> to vector<4x256xbf16>
    %c2_36 = arith.constant 2 : index
    %c0_37 = arith.constant 0 : index
    %c0_38 = arith.constant 0 : index
    %41 = vector.load %arg1[%c2_36, %c0_37, %c0_38] : memref<9x16x4xbf16, #tpu.memory_space<vmem>>, vector<1x16x4xbf16>
    %42 = vector.shape_cast %41 : vector<1x16x4xbf16> to vector<16x4xbf16>
    %cst_39 = arith.constant dense<0.000000e+00> : vector<16x256xf32>
    %43 = tpu.matmul %42, %40, %cst_39 {dimension_numbers = #tpu.dot_dimension_numbers<[1], [0], [0], [1], [0, 0, 1, 1], [], []>} : vector<16x4xbf16>, vector<4x256xbf16>, vector<16x256xf32> -> vector<16x256xf32>
    %44 = arith.addf %38, %43 : vector<16x256xf32>
    %c0_40 = arith.constant 0 : index
    %c0_41 = arith.constant 0 : index
    %c18 = arith.constant 18 : index
    %45 = vector.load %arg4[%c0_40, %c0_41, %c18] : memref<1x4x384xbf16, #tpu.memory_space<vmem>>, vector<1x4x256xbf16>
    %46 = vector.shape_cast %45 : vector<1x4x256xbf16> to vector<4x256xbf16>
    %c5 = arith.constant 5 : index
    %c0_42 = arith.constant 0 : index
    %c0_43 = arith.constant 0 : index
    %47 = vector.load %arg1[%c5, %c0_42, %c0_43] : memref<9x16x4xbf16, #tpu.memory_space<vmem>>, vector<1x16x4xbf16>
    %48 = vector.shape_cast %47 : vector<1x16x4xbf16> to vector<16x4xbf16>
    %cst_44 = arith.constant dense<0.000000e+00> : vector<16x256xf32>
    %49 = tpu.matmul %48, %46, %cst_44 {dimension_numbers = #tpu.dot_dimension_numbers<[1], [0], [0], [1], [0, 0, 1, 1], [], []>} : vector<16x4xbf16>, vector<4x256xbf16>, vector<16x256xf32> -> vector<16x256xf32>
    %50 = arith.addf %44, %49 : vector<16x256xf32>
    %c0_45 = arith.constant 0 : index
    %c0_46 = arith.constant 0 : index
    %c34 = arith.constant 34 : index
    %51 = vector.load %arg4[%c0_45, %c0_46, %c34] : memref<1x4x384xbf16, #tpu.memory_space<vmem>>, vector<1x4x256xbf16>
    %52 = vector.shape_cast %51 : vector<1x4x256xbf16> to vector<4x256xbf16>
    %c8 = arith.constant 8 : index
    %c0_47 = arith.constant 0 : index
    %c0_48 = arith.constant 0 : index
    %53 = vector.load %arg1[%c8, %c0_47, %c0_48] : memref<9x16x4xbf16, #tpu.memory_space<vmem>>, vector<1x16x4xbf16>
    %54 = vector.shape_cast %53 : vector<1x16x4xbf16> to vector<16x4xbf16>
    %cst_49 = arith.constant dense<0.000000e+00> : vector<16x256xf32>
    %55 = tpu.matmul %54, %52, %cst_49 {dimension_numbers = #tpu.dot_dimension_numbers<[1], [0], [0], [1], [0, 0, 1, 1], [], []>} : vector<16x4xbf16>, vector<4x256xbf16>, vector<16x256xf32> -> vector<16x256xf32>
    %56 = arith.addf %50, %55 : vector<16x256xf32>
    %c0_50 = arith.constant 0 : index
    %c0_51 = arith.constant 0 : index
    %57 = vector.load %arg2[%c0_50, %c0_51] : memref<2x256xf32, #tpu.memory_space<vmem>>, vector<1x256xf32>
    %c1_52 = arith.constant 1 : index
    %c0_53 = arith.constant 0 : index
    %58 = vector.load %arg2[%c1_52, %c0_53] : memref<2x256xf32, #tpu.memory_space<vmem>>, vector<1x256xf32>
    %59 = vector.broadcast %57 : vector<1x256xf32> to vector<16x256xf32>
    %60 = arith.mulf %59, %18 : vector<16x256xf32>
    %61 = arith.addf %37, %60 : vector<16x256xf32>
    %62 = vector.broadcast %58 : vector<1x256xf32> to vector<16x256xf32>
    %63 = arith.mulf %62, %56 : vector<16x256xf32>
    %64 = arith.addf %61, %63 : vector<16x256xf32>
    %c0_54 = arith.constant 0 : index
    %c0_55 = arith.constant 0 : index
    %65 = vector.load %arg3[%c0_54, %c0_55] : memref<16x1xf32, #tpu.memory_space<vmem>>, vector<16x1xf32>
    %66 = vector.broadcast %65 : vector<16x1xf32> to vector<16x256xf32>
    %67 = arith.addf %64, %66 : vector<16x256xf32>
    %cst_56 = arith.constant dense<0.000000e+00> : vector<16xf32>
    %68 = vector.multi_reduction <add>, %67, %cst_56 [1] : vector<16x256xf32> to vector<16xf32>
    %69 = vector.shape_cast %68 : vector<16xf32> to vector<16x1xf32>
    %c0_57 = arith.constant 0 : index
    %c0_58 = arith.constant 0 : index
    %c0_59 = arith.constant 0 : index
    %70 = vector.load %arg6[%c0_57, %c0_58, %c0_59] : memref<1x16x1xf32, #tpu.memory_space<vmem>>, vector<1x16x1xf32>
    %71 = vector.shape_cast %70 : vector<1x16x1xf32> to vector<16x1xf32>
    %72 = vector.shape_cast %69 : vector<16x1xf32> to vector<1x16x1xf32>
    tpu.vector_store %arg6[%c0_57, %c0_58, %c0_59], %72 {strides = array<i32>} : memref<1x16x1xf32, #tpu.memory_space<vmem>>, vector<1x16x1xf32>,
    %73 = arith.mulf %67, %67 : vector<16x256xf32>
    %cst_60 = arith.constant dense<0.000000e+00> : vector<16xf32>
    %74 = vector.multi_reduction <add>, %73, %cst_60 [1] : vector<16x256xf32> to vector<16xf32>
    %75 = vector.shape_cast %74 : vector<16xf32> to vector<16x1xf32>
    %c0_61 = arith.constant 0 : index
    %c0_62 = arith.constant 0 : index
    %c0_63 = arith.constant 0 : index
    %76 = vector.load %arg7[%c0_61, %c0_62, %c0_63] : memref<1x16x1xf32, #tpu.memory_space<vmem>>, vector<1x16x1xf32>
    %77 = vector.shape_cast %76 : vector<1x16x1xf32> to vector<16x1xf32>
    %78 = vector.shape_cast %75 : vector<16x1xf32> to vector<1x16x1xf32>
    tpu.vector_store %arg7[%c0_61, %c0_62, %c0_63], %78 {strides = array<i32>} : memref<1x16x1xf32, #tpu.memory_space<vmem>>, vector<1x16x1xf32>,
    %79 = arith.truncf %67 : vector<16x256xf32> to vector<16x256xbf16>
    %c0_64 = arith.constant 0 : index
    %c0_65 = arith.constant 0 : index
    %c0_66 = arith.constant 0 : index
    %80 = vector.load %arg5[%c0_64, %c0_65, %c0_66] : memref<1x16x256xbf16, #tpu.memory_space<vmem>>, vector<1x16x256xbf16>
    %81 = vector.shape_cast %80 : vector<1x16x256xbf16> to vector<16x256xbf16>
    %82 = vector.shape_cast %79 : vector<16x256xbf16> to vector<1x16x256xbf16>
    tpu.vector_store %arg5[%c0_64, %c0_65, %c0_66], %82 {strides = array<i32>} : memref<1x16x256xbf16, #tpu.memory_space<vmem>>, vector<1x16x256xbf16>,
    return
  }
  func.func @transform_0(%arg0: i32) -> (i32, i32, i32) {
    %c0_i32 = arith.constant 0 : i32
    %c0_i32_0 = arith.constant 0 : i32
    %c0_i32_1 = arith.constant 0 : i32
    %c0_i32_2 = arith.constant 0 : i32
    return %c0_i32, %c0_i32_0, %c0_i32_1 : i32, i32, i32
  }
  func.func @transform_1(%arg0: i32) -> (i32, i32) {
    %c0_i32 = arith.constant 0 : i32
    %c0_i32_0 = arith.constant 0 : i32
    %c0_i32_1 = arith.constant 0 : i32
    return %c0_i32, %c0_i32_0 : i32, i32
  }
  func.func @transform_2(%arg0: i32) -> (i32, i32) {
    %c0_i32 = arith.constant 0 : i32
    %c0_i32_0 = arith.constant 0 : i32
    %c0_i32_1 = arith.constant 0 : i32
    return %c0_i32, %c0_i32_0 : i32, i32
  }
  func.func @transform_3(%arg0: i32) -> (i32, i32, i32) {
    %c0_i32 = arith.constant 0 : i32
    %c0_i32_0 = arith.constant 0 : i32
    %c0_i32_1 = arith.constant 0 : i32
    return %arg0, %c0_i32, %c0_i32_0 : i32, i32, i32
  }
  func.func @transform_4(%arg0: i32) -> (i32, i32, i32) {
    %c0_i32 = arith.constant 0 : i32
    %c0_i32_0 = arith.constant 0 : i32
    %c0_i32_1 = arith.constant 0 : i32
    return %arg0, %c0_i32, %c0_i32_0 : i32, i32, i32
  }
  func.func @transform_5(%arg0: i32) -> (i32, i32, i32) {
    %c0_i32 = arith.constant 0 : i32
    %c0_i32_0 = arith.constant 0 : i32
    %c0_i32_1 = arith.constant 0 : i32
    return %arg0, %c0_i32, %c0_i32_0 : i32, i32, i32
  }
  func.func @transform_6(%arg0: i32) -> (i32, i32, i32) {
    %c0_i32 = arith.constant 0 : i32
    %c0_i32_0 = arith.constant 0 : i32
    %c0_i32_1 = arith.constant 0 : i32
    return %arg0, %c0_i32, %c0_i32_0 : i32, i32, i32
  }
}

module attributes {stable_mosaic.version = 11 : i64} {
  func.func @_conv_stats_fused_kernel(%arg0: i32, %arg1: memref<9x4x16xbf16, #tpu.memory_space<vmem>>, %arg2: memref<2x256xf32, #tpu.memory_space<vmem>>, %arg3: memref<4x1xf32, #tpu.memory_space<vmem>>, %arg4: memref<1x16x256xbf16, #tpu.memory_space<vmem>>, %arg5: memref<16x1xf32, #tpu.memory_space<vmem>>, %arg6: memref<16x1xf32, #tpu.memory_space<vmem>>, %arg7: memref<1x4x256xbf16, #tpu.memory_space<vmem>>, %arg8: memref<1x4x1xf32, #tpu.memory_space<vmem>>, %arg9: memref<1x4x1xf32, #tpu.memory_space<vmem>>, %arg10: memref<1x16x384xbf16, #tpu.memory_space<vmem>>) attributes {dimension_semantics = [#tpu.dimension_semantics<parallel>], iteration_bounds = array<i64: 2>, scalar_prefetch = 0 : i64, scratch_operands = 1 : i64, tpu.core_type = #tpu.core_type<tc>, window_params = [{pipeline_mode = #tpu.pipeline_mode<synchronous>, transform_indices = @transform_0, window_bounds = array<i64: 9, 4, 16>}, {pipeline_mode = #tpu.pipeline_mode<synchronous>, transform_indices = @transform_1, window_bounds = array<i64: 2, 256>}, {pipeline_mode = #tpu.pipeline_mode<synchronous>, transform_indices = @transform_2, window_bounds = array<i64: 4, 1>}, {transform_indices = @transform_3, window_bounds = array<i64: 1, 16, 256>}, {pipeline_mode = #tpu.pipeline_mode<synchronous>, transform_indices = @transform_4, window_bounds = array<i64: 16, 1>}, {pipeline_mode = #tpu.pipeline_mode<synchronous>, transform_indices = @transform_5, window_bounds = array<i64: 16, 1>}, {transform_indices = @transform_6, window_bounds = array<i64: 1, 4, 256>}, {transform_indices = @transform_7, window_bounds = array<i64: 1, 4, 1>}, {transform_indices = @transform_8, window_bounds = array<i64: 1, 4, 1>}]} {
    %c0 = arith.constant 0 : index
    %c0_0 = arith.constant 0 : index
    %c0_1 = arith.constant 0 : index
    %0 = vector.load %arg4[%c0, %c0_0, %c0_1] : memref<1x16x256xbf16, #tpu.memory_space<vmem>>, vector<1x16x256xbf16>
    %1 = vector.shape_cast %0 : vector<1x16x256xbf16> to vector<16x256xbf16>
    %2 = arith.extf %1 : vector<16x256xbf16> to vector<16x256xf32>
    %c0_2 = arith.constant 0 : index
    %c0_3 = arith.constant 0 : index
    %3 = vector.load %arg5[%c0_2, %c0_3] : memref<16x1xf32, #tpu.memory_space<vmem>>, vector<16x1xf32>
    %4 = vector.broadcast %3 : vector<16x1xf32> to vector<16x256xf32>
    %5 = arith.mulf %2, %4 : vector<16x256xf32>
    %c0_4 = arith.constant 0 : index
    %c0_5 = arith.constant 0 : index
    %6 = vector.load %arg6[%c0_4, %c0_5] : memref<16x1xf32, #tpu.memory_space<vmem>>, vector<16x1xf32>
    %7 = vector.broadcast %6 : vector<16x1xf32> to vector<16x256xf32>
    %8 = arith.addf %5, %7 : vector<16x256xf32>
    %cst = arith.constant 0.000000e+00 : f32
    %9 = vector.broadcast %cst : f32 to vector<16x256xf32>
    %10 = arith.maximumf %8, %9 : vector<16x256xf32>
    %cst_6 = arith.constant 0.000000e+00 : bf16
    %11 = vector.broadcast %cst_6 : bf16 to vector<1x16x384xbf16>
    %c0_7 = arith.constant 0 : index
    %c0_8 = arith.constant 0 : index
    %c0_9 = arith.constant 0 : index
    %12 = vector.load %arg10[%c0_7, %c0_8, %c0_9] : memref<1x16x384xbf16, #tpu.memory_space<vmem>>, vector<1x16x384xbf16>
    tpu.vector_store %arg10[%c0_7, %c0_8, %c0_9], %11 {strides = array<i32>} : memref<1x16x384xbf16, #tpu.memory_space<vmem>>, vector<1x16x384xbf16>,
    %13 = arith.truncf %10 : vector<16x256xf32> to vector<16x256xbf16>
    %c0_10 = arith.constant 0 : index
    %c0_11 = arith.constant 0 : index
    %c17 = arith.constant 17 : index
    %14 = vector.load %arg10[%c0_10, %c0_11, %c17] : memref<1x16x384xbf16, #tpu.memory_space<vmem>>, vector<1x16x256xbf16>
    %15 = vector.shape_cast %14 : vector<1x16x256xbf16> to vector<16x256xbf16>
    %16 = vector.shape_cast %13 : vector<16x256xbf16> to vector<1x16x256xbf16>
    tpu.vector_store %arg10[%c0_10, %c0_11, %c17], %16 {strides = array<i32>} : memref<1x16x384xbf16, #tpu.memory_space<vmem>>, vector<1x16x256xbf16>,
    %cst_12 = arith.constant 0.000000e+00 : f32
    %17 = vector.broadcast %cst_12 : f32 to vector<4x256xf32>
    %c0_13 = arith.constant 0 : index
    %c0_14 = arith.constant 0 : index
    %c0_15 = arith.constant 0 : index
    %18 = vector.load %arg10[%c0_13, %c0_14, %c0_15] : memref<1x16x384xbf16, #tpu.memory_space<vmem>>, vector<1x16x256xbf16>
    %19 = vector.shape_cast %18 : vector<1x16x256xbf16> to vector<16x256xbf16>
    %c0_16 = arith.constant 0 : index
    %c0_17 = arith.constant 0 : index
    %c0_18 = arith.constant 0 : index
    %20 = vector.load %arg1[%c0_16, %c0_17, %c0_18] : memref<9x4x16xbf16, #tpu.memory_space<vmem>>, vector<1x4x16xbf16>
    %21 = vector.shape_cast %20 : vector<1x4x16xbf16> to vector<4x16xbf16>
    %cst_19 = arith.constant dense<0.000000e+00> : vector<4x256xf32>
    %22 = tpu.matmul %21, %19, %cst_19 {dimension_numbers = #tpu.dot_dimension_numbers<[1], [0], [0], [1], [0, 0, 1, 1], [], []>} : vector<4x16xbf16>, vector<16x256xbf16>, vector<4x256xf32> -> vector<4x256xf32>
    %23 = arith.addf %17, %22 : vector<4x256xf32>
    %c0_20 = arith.constant 0 : index
    %c0_21 = arith.constant 0 : index
    %c16 = arith.constant 16 : index
    %24 = vector.load %arg10[%c0_20, %c0_21, %c16] : memref<1x16x384xbf16, #tpu.memory_space<vmem>>, vector<1x16x256xbf16>
    %25 = vector.shape_cast %24 : vector<1x16x256xbf16> to vector<16x256xbf16>
    %c3 = arith.constant 3 : index
    %c0_22 = arith.constant 0 : index
    %c0_23 = arith.constant 0 : index
    %26 = vector.load %arg1[%c3, %c0_22, %c0_23] : memref<9x4x16xbf16, #tpu.memory_space<vmem>>, vector<1x4x16xbf16>
    %27 = vector.shape_cast %26 : vector<1x4x16xbf16> to vector<4x16xbf16>
    %cst_24 = arith.constant dense<0.000000e+00> : vector<4x256xf32>
    %28 = tpu.matmul %27, %25, %cst_24 {dimension_numbers = #tpu.dot_dimension_numbers<[1], [0], [0], [1], [0, 0, 1, 1], [], []>} : vector<4x16xbf16>, vector<16x256xbf16>, vector<4x256xf32> -> vector<4x256xf32>
    %29 = arith.addf %23, %28 : vector<4x256xf32>
    %c0_25 = arith.constant 0 : index
    %c0_26 = arith.constant 0 : index
    %c32 = arith.constant 32 : index
    %30 = vector.load %arg10[%c0_25, %c0_26, %c32] : memref<1x16x384xbf16, #tpu.memory_space<vmem>>, vector<1x16x256xbf16>
    %31 = vector.shape_cast %30 : vector<1x16x256xbf16> to vector<16x256xbf16>
    %c6 = arith.constant 6 : index
    %c0_27 = arith.constant 0 : index
    %c0_28 = arith.constant 0 : index
    %32 = vector.load %arg1[%c6, %c0_27, %c0_28] : memref<9x4x16xbf16, #tpu.memory_space<vmem>>, vector<1x4x16xbf16>
    %33 = vector.shape_cast %32 : vector<1x4x16xbf16> to vector<4x16xbf16>
    %cst_29 = arith.constant dense<0.000000e+00> : vector<4x256xf32>
    %34 = tpu.matmul %33, %31, %cst_29 {dimension_numbers = #tpu.dot_dimension_numbers<[1], [0], [0], [1], [0, 0, 1, 1], [], []>} : vector<4x16xbf16>, vector<16x256xbf16>, vector<4x256xf32> -> vector<4x256xf32>
    %35 = arith.addf %29, %34 : vector<4x256xf32>
    %cst_30 = arith.constant 0.000000e+00 : f32
    %36 = vector.broadcast %cst_30 : f32 to vector<4x256xf32>
    %c0_31 = arith.constant 0 : index
    %c0_32 = arith.constant 0 : index
    %c1 = arith.constant 1 : index
    %37 = vector.load %arg10[%c0_31, %c0_32, %c1] : memref<1x16x384xbf16, #tpu.memory_space<vmem>>, vector<1x16x256xbf16>
    %38 = vector.shape_cast %37 : vector<1x16x256xbf16> to vector<16x256xbf16>
    %c1_33 = arith.constant 1 : index
    %c0_34 = arith.constant 0 : index
    %c0_35 = arith.constant 0 : index
    %39 = vector.load %arg1[%c1_33, %c0_34, %c0_35] : memref<9x4x16xbf16, #tpu.memory_space<vmem>>, vector<1x4x16xbf16>
    %40 = vector.shape_cast %39 : vector<1x4x16xbf16> to vector<4x16xbf16>
    %cst_36 = arith.constant dense<0.000000e+00> : vector<4x256xf32>
    %41 = tpu.matmul %40, %38, %cst_36 {dimension_numbers = #tpu.dot_dimension_numbers<[1], [0], [0], [1], [0, 0, 1, 1], [], []>} : vector<4x16xbf16>, vector<16x256xbf16>, vector<4x256xf32> -> vector<4x256xf32>
    %42 = arith.addf %36, %41 : vector<4x256xf32>
    %c0_37 = arith.constant 0 : index
    %c0_38 = arith.constant 0 : index
    %c17_39 = arith.constant 17 : index
    %43 = vector.load %arg10[%c0_37, %c0_38, %c17_39] : memref<1x16x384xbf16, #tpu.memory_space<vmem>>, vector<1x16x256xbf16>
    %44 = vector.shape_cast %43 : vector<1x16x256xbf16> to vector<16x256xbf16>
    %c4 = arith.constant 4 : index
    %c0_40 = arith.constant 0 : index
    %c0_41 = arith.constant 0 : index
    %45 = vector.load %arg1[%c4, %c0_40, %c0_41] : memref<9x4x16xbf16, #tpu.memory_space<vmem>>, vector<1x4x16xbf16>
    %46 = vector.shape_cast %45 : vector<1x4x16xbf16> to vector<4x16xbf16>
    %cst_42 = arith.constant dense<0.000000e+00> : vector<4x256xf32>
    %47 = tpu.matmul %46, %44, %cst_42 {dimension_numbers = #tpu.dot_dimension_numbers<[1], [0], [0], [1], [0, 0, 1, 1], [], []>} : vector<4x16xbf16>, vector<16x256xbf16>, vector<4x256xf32> -> vector<4x256xf32>
    %48 = arith.addf %42, %47 : vector<4x256xf32>
    %c0_43 = arith.constant 0 : index
    %c0_44 = arith.constant 0 : index
    %c33 = arith.constant 33 : index
    %49 = vector.load %arg10[%c0_43, %c0_44, %c33] : memref<1x16x384xbf16, #tpu.memory_space<vmem>>, vector<1x16x256xbf16>
    %50 = vector.shape_cast %49 : vector<1x16x256xbf16> to vector<16x256xbf16>
    %c7 = arith.constant 7 : index
    %c0_45 = arith.constant 0 : index
    %c0_46 = arith.constant 0 : index
    %51 = vector.load %arg1[%c7, %c0_45, %c0_46] : memref<9x4x16xbf16, #tpu.memory_space<vmem>>, vector<1x4x16xbf16>
    %52 = vector.shape_cast %51 : vector<1x4x16xbf16> to vector<4x16xbf16>
    %cst_47 = arith.constant dense<0.000000e+00> : vector<4x256xf32>
    %53 = tpu.matmul %52, %50, %cst_47 {dimension_numbers = #tpu.dot_dimension_numbers<[1], [0], [0], [1], [0, 0, 1, 1], [], []>} : vector<4x16xbf16>, vector<16x256xbf16>, vector<4x256xf32> -> vector<4x256xf32>
    %54 = arith.addf %48, %53 : vector<4x256xf32>
    %cst_48 = arith.constant 0.000000e+00 : f32
    %55 = vector.broadcast %cst_48 : f32 to vector<4x256xf32>
    %c0_49 = arith.constant 0 : index
    %c0_50 = arith.constant 0 : index
    %c2 = arith.constant 2 : index
    %56 = vector.load %arg10[%c0_49, %c0_50, %c2] : memref<1x16x384xbf16, #tpu.memory_space<vmem>>, vector<1x16x256xbf16>
    %57 = vector.shape_cast %56 : vector<1x16x256xbf16> to vector<16x256xbf16>
    %c2_51 = arith.constant 2 : index
    %c0_52 = arith.constant 0 : index
    %c0_53 = arith.constant 0 : index
    %58 = vector.load %arg1[%c2_51, %c0_52, %c0_53] : memref<9x4x16xbf16, #tpu.memory_space<vmem>>, vector<1x4x16xbf16>
    %59 = vector.shape_cast %58 : vector<1x4x16xbf16> to vector<4x16xbf16>
    %cst_54 = arith.constant dense<0.000000e+00> : vector<4x256xf32>
    %60 = tpu.matmul %59, %57, %cst_54 {dimension_numbers = #tpu.dot_dimension_numbers<[1], [0], [0], [1], [0, 0, 1, 1], [], []>} : vector<4x16xbf16>, vector<16x256xbf16>, vector<4x256xf32> -> vector<4x256xf32>
    %61 = arith.addf %55, %60 : vector<4x256xf32>
    %c0_55 = arith.constant 0 : index
    %c0_56 = arith.constant 0 : index
    %c18 = arith.constant 18 : index
    %62 = vector.load %arg10[%c0_55, %c0_56, %c18] : memref<1x16x384xbf16, #tpu.memory_space<vmem>>, vector<1x16x256xbf16>
    %63 = vector.shape_cast %62 : vector<1x16x256xbf16> to vector<16x256xbf16>
    %c5 = arith.constant 5 : index
    %c0_57 = arith.constant 0 : index
    %c0_58 = arith.constant 0 : index
    %64 = vector.load %arg1[%c5, %c0_57, %c0_58] : memref<9x4x16xbf16, #tpu.memory_space<vmem>>, vector<1x4x16xbf16>
    %65 = vector.shape_cast %64 : vector<1x4x16xbf16> to vector<4x16xbf16>
    %cst_59 = arith.constant dense<0.000000e+00> : vector<4x256xf32>
    %66 = tpu.matmul %65, %63, %cst_59 {dimension_numbers = #tpu.dot_dimension_numbers<[1], [0], [0], [1], [0, 0, 1, 1], [], []>} : vector<4x16xbf16>, vector<16x256xbf16>, vector<4x256xf32> -> vector<4x256xf32>
    %67 = arith.addf %61, %66 : vector<4x256xf32>
    %c0_60 = arith.constant 0 : index
    %c0_61 = arith.constant 0 : index
    %c34 = arith.constant 34 : index
    %68 = vector.load %arg10[%c0_60, %c0_61, %c34] : memref<1x16x384xbf16, #tpu.memory_space<vmem>>, vector<1x16x256xbf16>
    %69 = vector.shape_cast %68 : vector<1x16x256xbf16> to vector<16x256xbf16>
    %c8 = arith.constant 8 : index
    %c0_62 = arith.constant 0 : index
    %c0_63 = arith.constant 0 : index
    %70 = vector.load %arg1[%c8, %c0_62, %c0_63] : memref<9x4x16xbf16, #tpu.memory_space<vmem>>, vector<1x4x16xbf16>
    %71 = vector.shape_cast %70 : vector<1x4x16xbf16> to vector<4x16xbf16>
    %cst_64 = arith.constant dense<0.000000e+00> : vector<4x256xf32>
    %72 = tpu.matmul %71, %69, %cst_64 {dimension_numbers = #tpu.dot_dimension_numbers<[1], [0], [0], [1], [0, 0, 1, 1], [], []>} : vector<4x16xbf16>, vector<16x256xbf16>, vector<4x256xf32> -> vector<4x256xf32>
    %73 = arith.addf %67, %72 : vector<4x256xf32>
    %c0_65 = arith.constant 0 : index
    %c0_66 = arith.constant 0 : index
    %74 = vector.load %arg2[%c0_65, %c0_66] : memref<2x256xf32, #tpu.memory_space<vmem>>, vector<1x256xf32>
    %c1_67 = arith.constant 1 : index
    %c0_68 = arith.constant 0 : index
    %75 = vector.load %arg2[%c1_67, %c0_68] : memref<2x256xf32, #tpu.memory_space<vmem>>, vector<1x256xf32>
    %76 = vector.broadcast %74 : vector<1x256xf32> to vector<4x256xf32>
    %77 = arith.mulf %76, %35 : vector<4x256xf32>
    %78 = arith.addf %54, %77 : vector<4x256xf32>
    %79 = vector.broadcast %75 : vector<1x256xf32> to vector<4x256xf32>
    %80 = arith.mulf %79, %73 : vector<4x256xf32>
    %81 = arith.addf %78, %80 : vector<4x256xf32>
    %c0_69 = arith.constant 0 : index
    %c0_70 = arith.constant 0 : index
    %82 = vector.load %arg3[%c0_69, %c0_70] : memref<4x1xf32, #tpu.memory_space<vmem>>, vector<4x1xf32>
    %83 = vector.broadcast %82 : vector<4x1xf32> to vector<4x256xf32>
    %84 = arith.addf %81, %83 : vector<4x256xf32>
    %cst_71 = arith.constant dense<0.000000e+00> : vector<4xf32>
    %85 = vector.multi_reduction <add>, %84, %cst_71 [1] : vector<4x256xf32> to vector<4xf32>
    %86 = vector.shape_cast %85 : vector<4xf32> to vector<4x1xf32>
    %c0_72 = arith.constant 0 : index
    %c0_73 = arith.constant 0 : index
    %c0_74 = arith.constant 0 : index
    %87 = vector.load %arg8[%c0_72, %c0_73, %c0_74] : memref<1x4x1xf32, #tpu.memory_space<vmem>>, vector<1x4x1xf32>
    %88 = vector.shape_cast %87 : vector<1x4x1xf32> to vector<4x1xf32>
    %89 = vector.shape_cast %86 : vector<4x1xf32> to vector<1x4x1xf32>
    tpu.vector_store %arg8[%c0_72, %c0_73, %c0_74], %89 {strides = array<i32>} : memref<1x4x1xf32, #tpu.memory_space<vmem>>, vector<1x4x1xf32>,
    %90 = arith.mulf %84, %84 : vector<4x256xf32>
    %cst_75 = arith.constant dense<0.000000e+00> : vector<4xf32>
    %91 = vector.multi_reduction <add>, %90, %cst_75 [1] : vector<4x256xf32> to vector<4xf32>
    %92 = vector.shape_cast %91 : vector<4xf32> to vector<4x1xf32>
    %c0_76 = arith.constant 0 : index
    %c0_77 = arith.constant 0 : index
    %c0_78 = arith.constant 0 : index
    %93 = vector.load %arg9[%c0_76, %c0_77, %c0_78] : memref<1x4x1xf32, #tpu.memory_space<vmem>>, vector<1x4x1xf32>
    %94 = vector.shape_cast %93 : vector<1x4x1xf32> to vector<4x1xf32>
    %95 = vector.shape_cast %92 : vector<4x1xf32> to vector<1x4x1xf32>
    tpu.vector_store %arg9[%c0_76, %c0_77, %c0_78], %95 {strides = array<i32>} : memref<1x4x1xf32, #tpu.memory_space<vmem>>, vector<1x4x1xf32>,
    %96 = arith.truncf %84 : vector<4x256xf32> to vector<4x256xbf16>
    %c0_79 = arith.constant 0 : index
    %c0_80 = arith.constant 0 : index
    %c0_81 = arith.constant 0 : index
    %97 = vector.load %arg7[%c0_79, %c0_80, %c0_81] : memref<1x4x256xbf16, #tpu.memory_space<vmem>>, vector<1x4x256xbf16>
    %98 = vector.shape_cast %97 : vector<1x4x256xbf16> to vector<4x256xbf16>
    %99 = vector.shape_cast %96 : vector<4x256xbf16> to vector<1x4x256xbf16>
    tpu.vector_store %arg7[%c0_79, %c0_80, %c0_81], %99 {strides = array<i32>} : memref<1x4x256xbf16, #tpu.memory_space<vmem>>, vector<1x4x256xbf16>,
    return
  }
  func.func @transform_0(%arg0: i32) -> (i32, i32, i32) {
    %c0_i32 = arith.constant 0 : i32
    %c0_i32_0 = arith.constant 0 : i32
    %c0_i32_1 = arith.constant 0 : i32
    %c0_i32_2 = arith.constant 0 : i32
    return %c0_i32, %c0_i32_0, %c0_i32_1 : i32, i32, i32
  }
  func.func @transform_1(%arg0: i32) -> (i32, i32) {
    %c0_i32 = arith.constant 0 : i32
    %c0_i32_0 = arith.constant 0 : i32
    %c0_i32_1 = arith.constant 0 : i32
    return %c0_i32, %c0_i32_0 : i32, i32
  }
  func.func @transform_2(%arg0: i32) -> (i32, i32) {
    %c0_i32 = arith.constant 0 : i32
    %c0_i32_0 = arith.constant 0 : i32
    %c0_i32_1 = arith.constant 0 : i32
    return %c0_i32, %c0_i32_0 : i32, i32
  }
  func.func @transform_3(%arg0: i32) -> (i32, i32, i32) {
    %c0_i32 = arith.constant 0 : i32
    %c0_i32_0 = arith.constant 0 : i32
    %c0_i32_1 = arith.constant 0 : i32
    return %arg0, %c0_i32, %c0_i32_0 : i32, i32, i32
  }
  func.func @transform_4(%arg0: i32) -> (i32, i32) {
    %c0_i32 = arith.constant 0 : i32
    %c0_i32_0 = arith.constant 0 : i32
    %c0_i32_1 = arith.constant 0 : i32
    return %c0_i32, %c0_i32_0 : i32, i32
  }
  func.func @transform_5(%arg0: i32) -> (i32, i32) {
    %c0_i32 = arith.constant 0 : i32
    %c0_i32_0 = arith.constant 0 : i32
    %c0_i32_1 = arith.constant 0 : i32
    return %c0_i32, %c0_i32_0 : i32, i32
  }
  func.func @transform_6(%arg0: i32) -> (i32, i32, i32) {
    %c0_i32 = arith.constant 0 : i32
    %c0_i32_0 = arith.constant 0 : i32
    %c0_i32_1 = arith.constant 0 : i32
    return %arg0, %c0_i32, %c0_i32_0 : i32, i32, i32
  }
  func.func @transform_7(%arg0: i32) -> (i32, i32, i32) {
    %c0_i32 = arith.constant 0 : i32
    %c0_i32_0 = arith.constant 0 : i32
    %c0_i32_1 = arith.constant 0 : i32
    return %arg0, %c0_i32, %c0_i32_0 : i32, i32, i32
  }
  func.func @transform_8(%arg0: i32) -> (i32, i32, i32) {
    %c0_i32 = arith.constant 0 : i32
    %c0_i32_0 = arith.constant 0 : i32
    %c0_i32_1 = arith.constant 0 : i32
    return %arg0, %c0_i32, %c0_i32_0 : i32, i32, i32
  }
}

module attributes {stable_mosaic.version = 11 : i64} {
  func.func @_conv_stats_fused_kernel(%arg0: i32, %arg1: memref<9x16x4xbf16, #tpu.memory_space<vmem>>, %arg2: memref<2x256xf32, #tpu.memory_space<vmem>>, %arg3: memref<16x1xf32, #tpu.memory_space<vmem>>, %arg4: memref<1x4x256xbf16, #tpu.memory_space<vmem>>, %arg5: memref<4x1xf32, #tpu.memory_space<vmem>>, %arg6: memref<4x1xf32, #tpu.memory_space<vmem>>, %arg7: memref<1x4x256xf32, #tpu.memory_space<vmem>>, %arg8: memref<1x16x256xbf16, #tpu.memory_space<vmem>>, %arg9: memref<1x16x1xf32, #tpu.memory_space<vmem>>, %arg10: memref<1x16x1xf32, #tpu.memory_space<vmem>>, %arg11: memref<1x4x384xbf16, #tpu.memory_space<vmem>>) attributes {dimension_semantics = [#tpu.dimension_semantics<parallel>], iteration_bounds = array<i64: 2>, scalar_prefetch = 0 : i64, scratch_operands = 1 : i64, tpu.core_type = #tpu.core_type<tc>, window_params = [{pipeline_mode = #tpu.pipeline_mode<synchronous>, transform_indices = @transform_0, window_bounds = array<i64: 9, 16, 4>}, {pipeline_mode = #tpu.pipeline_mode<synchronous>, transform_indices = @transform_1, window_bounds = array<i64: 2, 256>}, {pipeline_mode = #tpu.pipeline_mode<synchronous>, transform_indices = @transform_2, window_bounds = array<i64: 16, 1>}, {transform_indices = @transform_3, window_bounds = array<i64: 1, 4, 256>}, {pipeline_mode = #tpu.pipeline_mode<synchronous>, transform_indices = @transform_4, window_bounds = array<i64: 4, 1>}, {pipeline_mode = #tpu.pipeline_mode<synchronous>, transform_indices = @transform_5, window_bounds = array<i64: 4, 1>}, {transform_indices = @transform_6, window_bounds = array<i64: 1, 4, 256>}, {transform_indices = @transform_7, window_bounds = array<i64: 1, 16, 256>}, {transform_indices = @transform_8, window_bounds = array<i64: 1, 16, 1>}, {transform_indices = @transform_9, window_bounds = array<i64: 1, 16, 1>}]} {
    %c0 = arith.constant 0 : index
    %c0_0 = arith.constant 0 : index
    %c0_1 = arith.constant 0 : index
    %0 = vector.load %arg4[%c0, %c0_0, %c0_1] : memref<1x4x256xbf16, #tpu.memory_space<vmem>>, vector<1x4x256xbf16>
    %1 = vector.shape_cast %0 : vector<1x4x256xbf16> to vector<4x256xbf16>
    %2 = arith.extf %1 : vector<4x256xbf16> to vector<4x256xf32>
    %c0_2 = arith.constant 0 : index
    %c0_3 = arith.constant 0 : index
    %3 = vector.load %arg5[%c0_2, %c0_3] : memref<4x1xf32, #tpu.memory_space<vmem>>, vector<4x1xf32>
    %4 = vector.broadcast %3 : vector<4x1xf32> to vector<4x256xf32>
    %5 = arith.mulf %2, %4 : vector<4x256xf32>
    %c0_4 = arith.constant 0 : index
    %c0_5 = arith.constant 0 : index
    %6 = vector.load %arg6[%c0_4, %c0_5] : memref<4x1xf32, #tpu.memory_space<vmem>>, vector<4x1xf32>
    %7 = vector.broadcast %6 : vector<4x1xf32> to vector<4x256xf32>
    %8 = arith.addf %5, %7 : vector<4x256xf32>
    %cst = arith.constant 0.000000e+00 : f32
    %9 = vector.broadcast %cst : f32 to vector<4x256xf32>
    %10 = arith.maximumf %8, %9 : vector<4x256xf32>
    %c0_6 = arith.constant 0 : index
    %c0_7 = arith.constant 0 : index
    %c0_8 = arith.constant 0 : index
    %11 = vector.load %arg7[%c0_6, %c0_7, %c0_8] : memref<1x4x256xf32, #tpu.memory_space<vmem>>, vector<1x4x256xf32>
    %12 = vector.shape_cast %11 : vector<1x4x256xf32> to vector<4x256xf32>
    %cst_9 = arith.constant -1.000000e+00 : f32
    %13 = vector.broadcast %cst_9 : f32 to vector<4x256xf32>
    %14 = arith.mulf %13, %12 : vector<4x256xf32>
    %15 = arith.addf %10, %14 : vector<4x256xf32>
    %cst_10 = arith.constant 0.000000e+00 : bf16
    %16 = vector.broadcast %cst_10 : bf16 to vector<1x4x384xbf16>
    %c0_11 = arith.constant 0 : index
    %c0_12 = arith.constant 0 : index
    %c0_13 = arith.constant 0 : index
    %17 = vector.load %arg11[%c0_11, %c0_12, %c0_13] : memref<1x4x384xbf16, #tpu.memory_space<vmem>>, vector<1x4x384xbf16>
    tpu.vector_store %arg11[%c0_11, %c0_12, %c0_13], %16 {strides = array<i32>} : memref<1x4x384xbf16, #tpu.memory_space<vmem>>, vector<1x4x384xbf16>,
    %18 = arith.truncf %15 : vector<4x256xf32> to vector<4x256xbf16>
    %c0_14 = arith.constant 0 : index
    %c0_15 = arith.constant 0 : index
    %c17 = arith.constant 17 : index
    %19 = vector.load %arg11[%c0_14, %c0_15, %c17] : memref<1x4x384xbf16, #tpu.memory_space<vmem>>, vector<1x4x256xbf16>
    %20 = vector.shape_cast %19 : vector<1x4x256xbf16> to vector<4x256xbf16>
    %21 = vector.shape_cast %18 : vector<4x256xbf16> to vector<1x4x256xbf16>
    tpu.vector_store %arg11[%c0_14, %c0_15, %c17], %21 {strides = array<i32>} : memref<1x4x384xbf16, #tpu.memory_space<vmem>>, vector<1x4x256xbf16>,
    %cst_16 = arith.constant 0.000000e+00 : f32
    %22 = vector.broadcast %cst_16 : f32 to vector<16x256xf32>
    %c0_17 = arith.constant 0 : index
    %c0_18 = arith.constant 0 : index
    %c0_19 = arith.constant 0 : index
    %23 = vector.load %arg11[%c0_17, %c0_18, %c0_19] : memref<1x4x384xbf16, #tpu.memory_space<vmem>>, vector<1x4x256xbf16>
    %24 = vector.shape_cast %23 : vector<1x4x256xbf16> to vector<4x256xbf16>
    %c0_20 = arith.constant 0 : index
    %c0_21 = arith.constant 0 : index
    %c0_22 = arith.constant 0 : index
    %25 = vector.load %arg1[%c0_20, %c0_21, %c0_22] : memref<9x16x4xbf16, #tpu.memory_space<vmem>>, vector<1x16x4xbf16>
    %26 = vector.shape_cast %25 : vector<1x16x4xbf16> to vector<16x4xbf16>
    %cst_23 = arith.constant dense<0.000000e+00> : vector<16x256xf32>
    %27 = tpu.matmul %26, %24, %cst_23 {dimension_numbers = #tpu.dot_dimension_numbers<[1], [0], [0], [1], [0, 0, 1, 1], [], []>} : vector<16x4xbf16>, vector<4x256xbf16>, vector<16x256xf32> -> vector<16x256xf32>
    %28 = arith.addf %22, %27 : vector<16x256xf32>
    %c0_24 = arith.constant 0 : index
    %c0_25 = arith.constant 0 : index
    %c16 = arith.constant 16 : index
    %29 = vector.load %arg11[%c0_24, %c0_25, %c16] : memref<1x4x384xbf16, #tpu.memory_space<vmem>>, vector<1x4x256xbf16>
    %30 = vector.shape_cast %29 : vector<1x4x256xbf16> to vector<4x256xbf16>
    %c3 = arith.constant 3 : index
    %c0_26 = arith.constant 0 : index
    %c0_27 = arith.constant 0 : index
    %31 = vector.load %arg1[%c3, %c0_26, %c0_27] : memref<9x16x4xbf16, #tpu.memory_space<vmem>>, vector<1x16x4xbf16>
    %32 = vector.shape_cast %31 : vector<1x16x4xbf16> to vector<16x4xbf16>
    %cst_28 = arith.constant dense<0.000000e+00> : vector<16x256xf32>
    %33 = tpu.matmul %32, %30, %cst_28 {dimension_numbers = #tpu.dot_dimension_numbers<[1], [0], [0], [1], [0, 0, 1, 1], [], []>} : vector<16x4xbf16>, vector<4x256xbf16>, vector<16x256xf32> -> vector<16x256xf32>
    %34 = arith.addf %28, %33 : vector<16x256xf32>
    %c0_29 = arith.constant 0 : index
    %c0_30 = arith.constant 0 : index
    %c32 = arith.constant 32 : index
    %35 = vector.load %arg11[%c0_29, %c0_30, %c32] : memref<1x4x384xbf16, #tpu.memory_space<vmem>>, vector<1x4x256xbf16>
    %36 = vector.shape_cast %35 : vector<1x4x256xbf16> to vector<4x256xbf16>
    %c6 = arith.constant 6 : index
    %c0_31 = arith.constant 0 : index
    %c0_32 = arith.constant 0 : index
    %37 = vector.load %arg1[%c6, %c0_31, %c0_32] : memref<9x16x4xbf16, #tpu.memory_space<vmem>>, vector<1x16x4xbf16>
    %38 = vector.shape_cast %37 : vector<1x16x4xbf16> to vector<16x4xbf16>
    %cst_33 = arith.constant dense<0.000000e+00> : vector<16x256xf32>
    %39 = tpu.matmul %38, %36, %cst_33 {dimension_numbers = #tpu.dot_dimension_numbers<[1], [0], [0], [1], [0, 0, 1, 1], [], []>} : vector<16x4xbf16>, vector<4x256xbf16>, vector<16x256xf32> -> vector<16x256xf32>
    %40 = arith.addf %34, %39 : vector<16x256xf32>
    %cst_34 = arith.constant 0.000000e+00 : f32
    %41 = vector.broadcast %cst_34 : f32 to vector<16x256xf32>
    %c0_35 = arith.constant 0 : index
    %c0_36 = arith.constant 0 : index
    %c1 = arith.constant 1 : index
    %42 = vector.load %arg11[%c0_35, %c0_36, %c1] : memref<1x4x384xbf16, #tpu.memory_space<vmem>>, vector<1x4x256xbf16>
    %43 = vector.shape_cast %42 : vector<1x4x256xbf16> to vector<4x256xbf16>
    %c1_37 = arith.constant 1 : index
    %c0_38 = arith.constant 0 : index
    %c0_39 = arith.constant 0 : index
    %44 = vector.load %arg1[%c1_37, %c0_38, %c0_39] : memref<9x16x4xbf16, #tpu.memory_space<vmem>>, vector<1x16x4xbf16>
    %45 = vector.shape_cast %44 : vector<1x16x4xbf16> to vector<16x4xbf16>
    %cst_40 = arith.constant dense<0.000000e+00> : vector<16x256xf32>
    %46 = tpu.matmul %45, %43, %cst_40 {dimension_numbers = #tpu.dot_dimension_numbers<[1], [0], [0], [1], [0, 0, 1, 1], [], []>} : vector<16x4xbf16>, vector<4x256xbf16>, vector<16x256xf32> -> vector<16x256xf32>
    %47 = arith.addf %41, %46 : vector<16x256xf32>
    %c0_41 = arith.constant 0 : index
    %c0_42 = arith.constant 0 : index
    %c17_43 = arith.constant 17 : index
    %48 = vector.load %arg11[%c0_41, %c0_42, %c17_43] : memref<1x4x384xbf16, #tpu.memory_space<vmem>>, vector<1x4x256xbf16>
    %49 = vector.shape_cast %48 : vector<1x4x256xbf16> to vector<4x256xbf16>
    %c4 = arith.constant 4 : index
    %c0_44 = arith.constant 0 : index
    %c0_45 = arith.constant 0 : index
    %50 = vector.load %arg1[%c4, %c0_44, %c0_45] : memref<9x16x4xbf16, #tpu.memory_space<vmem>>, vector<1x16x4xbf16>
    %51 = vector.shape_cast %50 : vector<1x16x4xbf16> to vector<16x4xbf16>
    %cst_46 = arith.constant dense<0.000000e+00> : vector<16x256xf32>
    %52 = tpu.matmul %51, %49, %cst_46 {dimension_numbers = #tpu.dot_dimension_numbers<[1], [0], [0], [1], [0, 0, 1, 1], [], []>} : vector<16x4xbf16>, vector<4x256xbf16>, vector<16x256xf32> -> vector<16x256xf32>
    %53 = arith.addf %47, %52 : vector<16x256xf32>
    %c0_47 = arith.constant 0 : index
    %c0_48 = arith.constant 0 : index
    %c33 = arith.constant 33 : index
    %54 = vector.load %arg11[%c0_47, %c0_48, %c33] : memref<1x4x384xbf16, #tpu.memory_space<vmem>>, vector<1x4x256xbf16>
    %55 = vector.shape_cast %54 : vector<1x4x256xbf16> to vector<4x256xbf16>
    %c7 = arith.constant 7 : index
    %c0_49 = arith.constant 0 : index
    %c0_50 = arith.constant 0 : index
    %56 = vector.load %arg1[%c7, %c0_49, %c0_50] : memref<9x16x4xbf16, #tpu.memory_space<vmem>>, vector<1x16x4xbf16>
    %57 = vector.shape_cast %56 : vector<1x16x4xbf16> to vector<16x4xbf16>
    %cst_51 = arith.constant dense<0.000000e+00> : vector<16x256xf32>
    %58 = tpu.matmul %57, %55, %cst_51 {dimension_numbers = #tpu.dot_dimension_numbers<[1], [0], [0], [1], [0, 0, 1, 1], [], []>} : vector<16x4xbf16>, vector<4x256xbf16>, vector<16x256xf32> -> vector<16x256xf32>
    %59 = arith.addf %53, %58 : vector<16x256xf32>
    %cst_52 = arith.constant 0.000000e+00 : f32
    %60 = vector.broadcast %cst_52 : f32 to vector<16x256xf32>
    %c0_53 = arith.constant 0 : index
    %c0_54 = arith.constant 0 : index
    %c2 = arith.constant 2 : index
    %61 = vector.load %arg11[%c0_53, %c0_54, %c2] : memref<1x4x384xbf16, #tpu.memory_space<vmem>>, vector<1x4x256xbf16>
    %62 = vector.shape_cast %61 : vector<1x4x256xbf16> to vector<4x256xbf16>
    %c2_55 = arith.constant 2 : index
    %c0_56 = arith.constant 0 : index
    %c0_57 = arith.constant 0 : index
    %63 = vector.load %arg1[%c2_55, %c0_56, %c0_57] : memref<9x16x4xbf16, #tpu.memory_space<vmem>>, vector<1x16x4xbf16>
    %64 = vector.shape_cast %63 : vector<1x16x4xbf16> to vector<16x4xbf16>
    %cst_58 = arith.constant dense<0.000000e+00> : vector<16x256xf32>
    %65 = tpu.matmul %64, %62, %cst_58 {dimension_numbers = #tpu.dot_dimension_numbers<[1], [0], [0], [1], [0, 0, 1, 1], [], []>} : vector<16x4xbf16>, vector<4x256xbf16>, vector<16x256xf32> -> vector<16x256xf32>
    %66 = arith.addf %60, %65 : vector<16x256xf32>
    %c0_59 = arith.constant 0 : index
    %c0_60 = arith.constant 0 : index
    %c18 = arith.constant 18 : index
    %67 = vector.load %arg11[%c0_59, %c0_60, %c18] : memref<1x4x384xbf16, #tpu.memory_space<vmem>>, vector<1x4x256xbf16>
    %68 = vector.shape_cast %67 : vector<1x4x256xbf16> to vector<4x256xbf16>
    %c5 = arith.constant 5 : index
    %c0_61 = arith.constant 0 : index
    %c0_62 = arith.constant 0 : index
    %69 = vector.load %arg1[%c5, %c0_61, %c0_62] : memref<9x16x4xbf16, #tpu.memory_space<vmem>>, vector<1x16x4xbf16>
    %70 = vector.shape_cast %69 : vector<1x16x4xbf16> to vector<16x4xbf16>
    %cst_63 = arith.constant dense<0.000000e+00> : vector<16x256xf32>
    %71 = tpu.matmul %70, %68, %cst_63 {dimension_numbers = #tpu.dot_dimension_numbers<[1], [0], [0], [1], [0, 0, 1, 1], [], []>} : vector<16x4xbf16>, vector<4x256xbf16>, vector<16x256xf32> -> vector<16x256xf32>
    %72 = arith.addf %66, %71 : vector<16x256xf32>
    %c0_64 = arith.constant 0 : index
    %c0_65 = arith.constant 0 : index
    %c34 = arith.constant 34 : index
    %73 = vector.load %arg11[%c0_64, %c0_65, %c34] : memref<1x4x384xbf16, #tpu.memory_space<vmem>>, vector<1x4x256xbf16>
    %74 = vector.shape_cast %73 : vector<1x4x256xbf16> to vector<4x256xbf16>
    %c8 = arith.constant 8 : index
    %c0_66 = arith.constant 0 : index
    %c0_67 = arith.constant 0 : index
    %75 = vector.load %arg1[%c8, %c0_66, %c0_67] : memref<9x16x4xbf16, #tpu.memory_space<vmem>>, vector<1x16x4xbf16>
    %76 = vector.shape_cast %75 : vector<1x16x4xbf16> to vector<16x4xbf16>
    %cst_68 = arith.constant dense<0.000000e+00> : vector<16x256xf32>
    %77 = tpu.matmul %76, %74, %cst_68 {dimension_numbers = #tpu.dot_dimension_numbers<[1], [0], [0], [1], [0, 0, 1, 1], [], []>} : vector<16x4xbf16>, vector<4x256xbf16>, vector<16x256xf32> -> vector<16x256xf32>
    %78 = arith.addf %72, %77 : vector<16x256xf32>
    %c0_69 = arith.constant 0 : index
    %c0_70 = arith.constant 0 : index
    %79 = vector.load %arg2[%c0_69, %c0_70] : memref<2x256xf32, #tpu.memory_space<vmem>>, vector<1x256xf32>
    %c1_71 = arith.constant 1 : index
    %c0_72 = arith.constant 0 : index
    %80 = vector.load %arg2[%c1_71, %c0_72] : memref<2x256xf32, #tpu.memory_space<vmem>>, vector<1x256xf32>
    %81 = vector.broadcast %79 : vector<1x256xf32> to vector<16x256xf32>
    %82 = arith.mulf %81, %40 : vector<16x256xf32>
    %83 = arith.addf %59, %82 : vector<16x256xf32>
    %84 = vector.broadcast %80 : vector<1x256xf32> to vector<16x256xf32>
    %85 = arith.mulf %84, %78 : vector<16x256xf32>
    %86 = arith.addf %83, %85 : vector<16x256xf32>
    %c0_73 = arith.constant 0 : index
    %c0_74 = arith.constant 0 : index
    %87 = vector.load %arg3[%c0_73, %c0_74] : memref<16x1xf32, #tpu.memory_space<vmem>>, vector<16x1xf32>
    %88 = vector.broadcast %87 : vector<16x1xf32> to vector<16x256xf32>
    %89 = arith.addf %86, %88 : vector<16x256xf32>
    %cst_75 = arith.constant dense<0.000000e+00> : vector<16xf32>
    %90 = vector.multi_reduction <add>, %89, %cst_75 [1] : vector<16x256xf32> to vector<16xf32>
    %91 = vector.shape_cast %90 : vector<16xf32> to vector<16x1xf32>
    %c0_76 = arith.constant 0 : index
    %c0_77 = arith.constant 0 : index
    %c0_78 = arith.constant 0 : index
    %92 = vector.load %arg9[%c0_76, %c0_77, %c0_78] : memref<1x16x1xf32, #tpu.memory_space<vmem>>, vector<1x16x1xf32>
    %93 = vector.shape_cast %92 : vector<1x16x1xf32> to vector<16x1xf32>
    %94 = vector.shape_cast %91 : vector<16x1xf32> to vector<1x16x1xf32>
    tpu.vector_store %arg9[%c0_76, %c0_77, %c0_78], %94 {strides = array<i32>} : memref<1x16x1xf32, #tpu.memory_space<vmem>>, vector<1x16x1xf32>,
    %95 = arith.mulf %89, %89 : vector<16x256xf32>
    %cst_79 = arith.constant dense<0.000000e+00> : vector<16xf32>
    %96 = vector.multi_reduction <add>, %95, %cst_79 [1] : vector<16x256xf32> to vector<16xf32>
    %97 = vector.shape_cast %96 : vector<16xf32> to vector<16x1xf32>
    %c0_80 = arith.constant 0 : index
    %c0_81 = arith.constant 0 : index
    %c0_82 = arith.constant 0 : index
    %98 = vector.load %arg10[%c0_80, %c0_81, %c0_82] : memref<1x16x1xf32, #tpu.memory_space<vmem>>, vector<1x16x1xf32>
    %99 = vector.shape_cast %98 : vector<1x16x1xf32> to vector<16x1xf32>
    %100 = vector.shape_cast %97 : vector<16x1xf32> to vector<1x16x1xf32>
    tpu.vector_store %arg10[%c0_80, %c0_81, %c0_82], %100 {strides = array<i32>} : memref<1x16x1xf32, #tpu.memory_space<vmem>>, vector<1x16x1xf32>,
    %101 = arith.truncf %89 : vector<16x256xf32> to vector<16x256xbf16>
    %c0_83 = arith.constant 0 : index
    %c0_84 = arith.constant 0 : index
    %c0_85 = arith.constant 0 : index
    %102 = vector.load %arg8[%c0_83, %c0_84, %c0_85] : memref<1x16x256xbf16, #tpu.memory_space<vmem>>, vector<1x16x256xbf16>
    %103 = vector.shape_cast %102 : vector<1x16x256xbf16> to vector<16x256xbf16>
    %104 = vector.shape_cast %101 : vector<16x256xbf16> to vector<1x16x256xbf16>
    tpu.vector_store %arg8[%c0_83, %c0_84, %c0_85], %104 {strides = array<i32>} : memref<1x16x256xbf16, #tpu.memory_space<vmem>>, vector<1x16x256xbf16>,
    return
  }
  func.func @transform_0(%arg0: i32) -> (i32, i32, i32) {
    %c0_i32 = arith.constant 0 : i32
    %c0_i32_0 = arith.constant 0 : i32
    %c0_i32_1 = arith.constant 0 : i32
    %c0_i32_2 = arith.constant 0 : i32
    return %c0_i32, %c0_i32_0, %c0_i32_1 : i32, i32, i32
  }
  func.func @transform_1(%arg0: i32) -> (i32, i32) {
    %c0_i32 = arith.constant 0 : i32
    %c0_i32_0 = arith.constant 0 : i32
    %c0_i32_1 = arith.constant 0 : i32
    return %c0_i32, %c0_i32_0 : i32, i32
  }
  func.func @transform_2(%arg0: i32) -> (i32, i32) {
    %c0_i32 = arith.constant 0 : i32
    %c0_i32_0 = arith.constant 0 : i32
    %c0_i32_1 = arith.constant 0 : i32
    return %c0_i32, %c0_i32_0 : i32, i32
  }
  func.func @transform_3(%arg0: i32) -> (i32, i32, i32) {
    %c0_i32 = arith.constant 0 : i32
    %c0_i32_0 = arith.constant 0 : i32
    %c0_i32_1 = arith.constant 0 : i32
    return %arg0, %c0_i32, %c0_i32_0 : i32, i32, i32
  }
  func.func @transform_4(%arg0: i32) -> (i32, i32) {
    %c0_i32 = arith.constant 0 : i32
    %c0_i32_0 = arith.constant 0 : i32
    %c0_i32_1 = arith.constant 0 : i32
    return %c0_i32, %c0_i32_0 : i32, i32
  }
  func.func @transform_5(%arg0: i32) -> (i32, i32) {
    %c0_i32 = arith.constant 0 : i32
    %c0_i32_0 = arith.constant 0 : i32
    %c0_i32_1 = arith.constant 0 : i32
    return %c0_i32, %c0_i32_0 : i32, i32
  }
  func.func @transform_6(%arg0: i32) -> (i32, i32, i32) {
    %c0_i32 = arith.constant 0 : i32
    %c0_i32_0 = arith.constant 0 : i32
    %c0_i32_1 = arith.constant 0 : i32
    return %arg0, %c0_i32, %c0_i32_0 : i32, i32, i32
  }
  func.func @transform_7(%arg0: i32) -> (i32, i32, i32) {
    %c0_i32 = arith.constant 0 : i32
    %c0_i32_0 = arith.constant 0 : i32
    %c0_i32_1 = arith.constant 0 : i32
    return %arg0, %c0_i32, %c0_i32_0 : i32, i32, i32
  }
  func.func @transform_8(%arg0: i32) -> (i32, i32, i32) {
    %c0_i32 = arith.constant 0 : i32
    %c0_i32_0 = arith.constant 0 : i32
    %c0_i32_1 = arith.constant 0 : i32
    return %arg0, %c0_i32, %c0_i32_0 : i32, i32, i32
  }
  func.func @transform_9(%arg0: i32) -> (i32, i32, i32) {
    %c0_i32 = arith.constant 0 : i32
    %c0_i32_0 = arith.constant 0 : i32
    %c0_i32_1 = arith.constant 0 : i32
    return %arg0, %c0_i32, %c0_i32_0 : i32, i32, i32
  }
}

module attributes {stable_mosaic.version = 11 : i64} {
  func.func @_final_apply_kernel(%arg0: i32, %arg1: memref<1x16x256xbf16, #tpu.memory_space<vmem>>, %arg2: memref<16x1xf32, #tpu.memory_space<vmem>>, %arg3: memref<16x1xf32, #tpu.memory_space<vmem>>, %arg4: memref<1x16x256xbf16, #tpu.memory_space<vmem>>, %arg5: memref<16x1xf32, #tpu.memory_space<vmem>>, %arg6: memref<16x1xf32, #tpu.memory_space<vmem>>, %arg7: memref<1x16x256xf32, #tpu.memory_space<vmem>>) attributes {dimension_semantics = [#tpu.dimension_semantics<parallel>], iteration_bounds = array<i64: 2>, scalar_prefetch = 0 : i64, scratch_operands = 0 : i64, tpu.core_type = #tpu.core_type<tc>, window_params = [{transform_indices = @transform_0, window_bounds = array<i64: 1, 16, 256>}, {pipeline_mode = #tpu.pipeline_mode<synchronous>, transform_indices = @transform_1, window_bounds = array<i64: 16, 1>}, {pipeline_mode = #tpu.pipeline_mode<synchronous>, transform_indices = @transform_2, window_bounds = array<i64: 16, 1>}, {transform_indices = @transform_3, window_bounds = array<i64: 1, 16, 256>}, {pipeline_mode = #tpu.pipeline_mode<synchronous>, transform_indices = @transform_4, window_bounds = array<i64: 16, 1>}, {pipeline_mode = #tpu.pipeline_mode<synchronous>, transform_indices = @transform_5, window_bounds = array<i64: 16, 1>}, {transform_indices = @transform_6, window_bounds = array<i64: 1, 16, 256>}]} {
    %c0 = arith.constant 0 : index
    %c0_0 = arith.constant 0 : index
    %c0_1 = arith.constant 0 : index
    %0 = vector.load %arg1[%c0, %c0_0, %c0_1] : memref<1x16x256xbf16, #tpu.memory_space<vmem>>, vector<1x16x256xbf16>
    %1 = vector.shape_cast %0 : vector<1x16x256xbf16> to vector<16x256xbf16>
    %2 = arith.extf %1 : vector<16x256xbf16> to vector<16x256xf32>
    %c0_2 = arith.constant 0 : index
    %c0_3 = arith.constant 0 : index
    %3 = vector.load %arg2[%c0_2, %c0_3] : memref<16x1xf32, #tpu.memory_space<vmem>>, vector<16x1xf32>
    %4 = vector.broadcast %3 : vector<16x1xf32> to vector<16x256xf32>
    %5 = arith.mulf %2, %4 : vector<16x256xf32>
    %c0_4 = arith.constant 0 : index
    %c0_5 = arith.constant 0 : index
    %6 = vector.load %arg3[%c0_4, %c0_5] : memref<16x1xf32, #tpu.memory_space<vmem>>, vector<16x1xf32>
    %7 = vector.broadcast %6 : vector<16x1xf32> to vector<16x256xf32>
    %8 = arith.addf %5, %7 : vector<16x256xf32>
    %cst = arith.constant 0.000000e+00 : f32
    %9 = vector.broadcast %cst : f32 to vector<16x256xf32>
    %10 = arith.maximumf %8, %9 : vector<16x256xf32>
    %c0_6 = arith.constant 0 : index
    %c0_7 = arith.constant 0 : index
    %c0_8 = arith.constant 0 : index
    %11 = vector.load %arg4[%c0_6, %c0_7, %c0_8] : memref<1x16x256xbf16, #tpu.memory_space<vmem>>, vector<1x16x256xbf16>
    %12 = vector.shape_cast %11 : vector<1x16x256xbf16> to vector<16x256xbf16>
    %13 = arith.extf %12 : vector<16x256xbf16> to vector<16x256xf32>
    %c0_9 = arith.constant 0 : index
    %c0_10 = arith.constant 0 : index
    %14 = vector.load %arg5[%c0_9, %c0_10] : memref<16x1xf32, #tpu.memory_space<vmem>>, vector<16x1xf32>
    %15 = vector.broadcast %14 : vector<16x1xf32> to vector<16x256xf32>
    %16 = arith.mulf %13, %15 : vector<16x256xf32>
    %c0_11 = arith.constant 0 : index
    %c0_12 = arith.constant 0 : index
    %17 = vector.load %arg6[%c0_11, %c0_12] : memref<16x1xf32, #tpu.memory_space<vmem>>, vector<16x1xf32>
    %18 = vector.broadcast %17 : vector<16x1xf32> to vector<16x256xf32>
    %19 = arith.addf %16, %18 : vector<16x256xf32>
    %cst_13 = arith.constant 0.000000e+00 : f32
    %20 = vector.broadcast %cst_13 : f32 to vector<16x256xf32>
    %21 = arith.maximumf %19, %20 : vector<16x256xf32>
    %22 = arith.addf %21, %10 : vector<16x256xf32>
    %c0_14 = arith.constant 0 : index
    %c0_15 = arith.constant 0 : index
    %c0_16 = arith.constant 0 : index
    %23 = vector.load %arg7[%c0_14, %c0_15, %c0_16] : memref<1x16x256xf32, #tpu.memory_space<vmem>>, vector<1x16x256xf32>
    %24 = vector.shape_cast %23 : vector<1x16x256xf32> to vector<16x256xf32>
    %25 = vector.shape_cast %22 : vector<16x256xf32> to vector<1x16x256xf32>
    tpu.vector_store %arg7[%c0_14, %c0_15, %c0_16], %25 {strides = array<i32>} : memref<1x16x256xf32, #tpu.memory_space<vmem>>, vector<1x16x256xf32>,
    return
  }
  func.func @transform_0(%arg0: i32) -> (i32, i32, i32) {
    %c0_i32 = arith.constant 0 : i32
    %c0_i32_0 = arith.constant 0 : i32
    %c0_i32_1 = arith.constant 0 : i32
    return %arg0, %c0_i32, %c0_i32_0 : i32, i32, i32
  }
  func.func @transform_1(%arg0: i32) -> (i32, i32) {
    %c0_i32 = arith.constant 0 : i32
    %c0_i32_0 = arith.constant 0 : i32
    %c0_i32_1 = arith.constant 0 : i32
    return %c0_i32, %c0_i32_0 : i32, i32
  }
  func.func @transform_2(%arg0: i32) -> (i32, i32) {
    %c0_i32 = arith.constant 0 : i32
    %c0_i32_0 = arith.constant 0 : i32
    %c0_i32_1 = arith.constant 0 : i32
    return %c0_i32, %c0_i32_0 : i32, i32
  }
  func.func @transform_3(%arg0: i32) -> (i32, i32, i32) {
    %c0_i32 = arith.constant 0 : i32
    %c0_i32_0 = arith.constant 0 : i32
    %c0_i32_1 = arith.constant 0 : i32
    return %arg0, %c0_i32, %c0_i32_0 : i32, i32, i32
  }
  func.func @transform_4(%arg0: i32) -> (i32, i32) {
    %c0_i32 = arith.constant 0 : i32
    %c0_i32_0 = arith.constant 0 : i32
    %c0_i32_1 = arith.constant 0 : i32
    return %c0_i32, %c0_i32_0 : i32, i32
  }
  func.func @transform_5(%arg0: i32) -> (i32, i32) {
    %c0_i32 = arith.constant 0 : i32
    %c0_i32_0 = arith.constant 0 : i32
    %c0_i32_1 = arith.constant 0 : i32
    return %c0_i32, %c0_i32_0 : i32, i32
  }
  func.func @transform_6(%arg0: i32) -> (i32, i32, i32) {
    %c0_i32 = arith.constant 0 : i32
    %c0_i32_0 = arith.constant 0 : i32
    %c0_i32_1 = arith.constant 0 : i32
    return %arg0, %c0_i32, %c0_i32_0 : i32, i32, i32
  }
}

</mosaic_0001>

<bundles_post_ra>
// kernel: squeeze.20
= control target key start
LH: loop header
LB: loop body
LE: loop exit
PB: predicated region body
PF: predicated region fallthrough
CT: control target
= control target key end

     0   :  { %s37_s8 = smov 116   ;;  %vm7_vm0 = vcmask 31744   ;;  %s38_s9 = smov 120   ;;  %s55_s0 = inlined_call_operand.vmem [shape: f32[16], index: 0, kind: input, shape index: {}]   ;;  %s56_s1 = inlined_call_operand.vmem [shape: f32[4,4], index: 1, kind: output, shape index: {}]  }
   0x1   :  { %v4_v0 = vld [vmem:[%s55_s0] sm:$0x1]  ;;  %s36_s0 = smov 124  }
   0x2   :  { %5 = vst [vmem:[#allocation1] sm:$0x1] %v4_v0 }
   0x9   :  { %v9_v1 = vld [vmem:[#allocation1] sm:$0x1]  }
   0xa   :  { %v21_v2 = vld [vmem:[#allocation1] sm:$0x1]   ;;  %10 = vrot.lane.b32.xlu0 %v9_v1, %s36_s0 }
   0xb   :  { %22 = vrot.lane.b32.xlu1 %v21_v2, %s37_s8  ;;  %v6_v3 = vld [vmem:[#allocation1] sm:$0x1]  }
   0xc   :  { %v15_v4 = vld [vmem:[#allocation1] sm:$0x1]   ;;  %8 = vst.msk [vmem:[#allocation0] sm:$0x1] %vm7_vm0, %v6_v3  }
   0xe   :  { %16 = vrot.lane.b32.xlu0 %v15_v4, %s38_s9 }
  0x7c   :  { %v11_v5 = vpop.permute.xlu0 %10  }
  0x7d   :  { %v23_v6 = vpop.permute.xlu1 %22   ;;  %14 = vst.msk [vmem:[#allocation0 + $0x1] sm:$0x1] %vm7_vm0, %v11_v5  }
  0x7e   :  { %26 = vst.msk [vmem:[#allocation0 + $0x3] sm:$0x1] %vm7_vm0, %v23_v6  }
  0x80   :  { %v17_v7 = vpop.permute.xlu0 %16  }
  0x81   :  { %20 = vst.msk [vmem:[#allocation0 + $0x2] sm:$0x1] %vm7_vm0, %v17_v7  }
  0x88   :  { %v30_v8 = vld [vmem:[#allocation0] sm:$0xf] }
  0x89   :  { %32 = vst [vmem:[%s56_s1] sm:$0xf] %v30_v8 }

// kernel: db_upsample.4
= control target key start
LH: loop header
LB: loop body
LE: loop exit
PB: predicated region body
PF: predicated region fallthrough
CT: control target
= control target key end

     0   :  { %s1413_s21 = smov 0   ;;  %s1550_s0 = inlined_call_operand.vmem [shape: bf16[9,16,4], index: 0, kind: input, shape index: {}]   ;;  %s1551_s1 = inlined_call_operand.vmem [shape: f32[2,256], index: 1, kind: input, shape index: {}]   ;;  %s1552_s2 = inlined_call_operand.vmem [shape: f32[16,1], index: 2, kind: input, shape index: {}]   ;;  %s1553_s3 = inlined_call_operand.vmem [shape: bf16[2,4,384], index: 3, kind: input, shape index: {}]   ;;  %s1554_s4 = inlined_call_operand.vmem [shape: bf16[2,16,256], index: 4, kind: output, shape index: {0}]   ;;  %s1555_s5 = inlined_call_operand.vmem [shape: f32[2,16,1], index: 5, kind: output, shape index: {1}]   ;;  %s1556_s6 = inlined_call_operand.vmem [shape: f32[2,16,1], index: 6, kind: output, shape index: {2}]  }
   0x1 LB: > { %s1234_s22 = sadd.s32 4294967295, %s1366_s21   ;;  %p1238_p0 = scmp.ge.s32.totalorder %s1366_s21, 1  ;;  %s1366_s21 = sphi %s1413_s21, %s17_s21  }
   0x2   : > { %p217_p1 = scmp.lt.s32.totalorder %s1366_s21, 3 }
   0x4   : > { %p218_p2 = pnand %p1238_p0, %p217_p1 }
   0x5   : > { %p257_p3 = scmp.lt.s32.totalorder (!%p218_p2), %s1234_s22, 1  ;;  %v295_v0 = vlaneseq (!%p218_p2)  ;;  %v1368_v1 = vmov (!%p218_p2), 1983009808   ;;  %v1369_v3 = vmov (!%p218_p2), 0   ;;  %s1370_s27 = smov (!%p218_p2), 96   ;;  %vm320_vm0 = vcmask (!%p218_p2), 1041408  }
   0x6   : > { %221 = sbr.rel (%p218_p2) target bundleno = 555 (0x22b), region = 36  ;;  %v293_v2 = vunpack.c.l.s4 (!%p218_p2), %v1368_v1  ;;  %425 = vmatprep.mubr.bf16.mxu0 (!%p218_p2), %v1369_v3  ;;  %359 = vmatprep.mubr.bf16.mxu1 (!%p218_p2), %v1369_v3  ;;  %s1371_s28 = smov (!%p218_p2), 112   ;;  %v1351_v21 = vld [vmem:[%s1550_s0] sm:$0xff] (!%p218_p2)   ;;  %vm316_vm1 = vcmask (!%p218_p2), 31744   ;;  %v1063_v42 = vld [vmem:[%s1552_s2 + $0x8] sm:$0xff] (!%p218_p2)  ;;  %vm313_vm2 = vcmask (!%p218_p2), 916480  }
   0x7   : > { %v1425_v4 = vshrl.u32 (!%p218_p2), %v295_v0, 7  ;;  %1343 = vset.pattern.permute.xlu0 (!%p218_p2), %v1369_v3  ;;  %1344 = vset.pattern.permute.xlu1 (!%p218_p2), %v1369_v3  ;;  %s1372_s29 = smov (!%p218_p2), 111   ;;  %s1373_s8 = smov (!%p218_p2), 110   ;;  %v1062_v41 = vld [vmem:[%s1552_s2] sm:$0xff] (!%p218_p2)  ;;  %vm468_vm3 = vcmask (!%p218_p2), 785408   ;;  %v1352_v52 = vld [vmem:[%s1550_s0 + $0x18] sm:$0xff] (!%p218_p2)  }
   0x8   : > { %v294_v5 = vunpack.c.0.s8 (!%p218_p2), %v293_v2  ;;  %s1374_s9 = smov (!%p218_p2), 127   ;;  %s1375_s10 = smov (!%p218_p2), 126   ;;  %vm562_vm4 = vcmask (!%p218_p2), 908288   ;;  %v1353_v58 = vld [vmem:[%s1550_s0 + $0x30] sm:$0xff] (!%p218_p2)   ;;  %vm809_vm5 = vcmask (!%p218_p2), 900096   ;;  %v1354_v0 = vld [vmem:[%s1550_s0 + $0x20] sm:$0xff] (!%p218_p2)  }
   0x9   : > { %s1376_s11 = smov (!%p218_p2), 95   ;;  %s1377_s12 = smov (!%p218_p2), 94   ;;  %vm628_vm6 = vcmask (!%p218_p2), 1039360   ;;  %vm875_vm7 = vcmask (!%p218_p2), 1031168   ;;  %vm715_vm8 = vcmask (!%p218_p2), 777216   ;;  %vm962_vm9 = vcmask (!%p218_p2), 769024  }
   0xa   : > { %v1431_v6 = vsub.s32 (!%p218_p2), %v294_v5, %v1425_v4  ;;  %vm1084_vm10 = vcmask (!%p218_p2), 7168  }
   0xd   : > { %s1558_s22 = smov (!%p257_p3, %s1234_s22), 1 }
   0xe   : > { %s1324_s23 = smul.u32 6, %s1558_s22  ;;  %s1533_s15 = sshll.u32 %s1558_s22, 4 }
   0xf   : > { %s266_s18 = scalar_lea.vmem %s1554_s4, %s1533_s15  ;;  %s271_s20 = scalar_lea.vmem %s1555_s5, %s1533_s15 }
  0x10   : > { %s1436_s26 = scalar_lea.vmem %s1553_s3, %s1324_s23  ;;  %s276_s25 = scalar_lea.vmem %s1556_s6, %s1533_s15 }
  0x11   : > { %v436_v7 = vld [vmem:[%s1436_s26] sm:$0x3f] }
  0x12   : > { %v281_v8 = vld [vmem:[%s1436_s26] sm:$0x3f]  ;;  %v453_v10 = vrot.slane %v436_v7, %v1431_v6  ;;  %v446_v14 = vcombine.high %v436_v7, %v436_v7 }
  0x13   : > { %v527_v9 = vld [vmem:[%s1436_s26] sm:$0x3f]  ;;  %v298_v11 = vrot.slane %v281_v8, %v1431_v6  ;;  %v291_v12 = vcombine.high %v281_v8, %v281_v8  ;;  %v1355_v8 = vld [vmem:[%s1550_s0 + $0x28] sm:$0xff]  }
  0x14   : > { %v1252_v13 = vld.sshfl [vmem:[%s1436_s26] sm:$0x33 pattern:$0x76325410]  ;;  %462 = vrot.lane.b32.xlu1 %v453_v10, %s1370_s27  ;;  %v547_v15 = vrot.slane %v527_v9, %v1431_v6  ;;  %v460_v20 = vrot.slane %v446_v14, %v1431_v6  ;;  %v461_v22 = vcombine.high %v453_v10, %v453_v10  ;;  %v540_v24 = vcombine.high %v527_v9, %v527_v9 }
  0x15   : > { %307 = vrot.lane.b32.xlu0 %v298_v11, %s1371_s28  ;;  %v305_v16 = vrot.slane %v291_v12, %v1431_v6  ;;  %v383_v17 = vcombine.high %v1252_v13, %v1252_v13  ;;  %v388_v18 = vsel %vm320_vm0, %v1252_v13, 0  ;;  %v306_v19 = vcombine.high %v298_v11, %v298_v11  ;;  %v774_v25 = vld [vmem:[%s1436_s26] sm:$0x3f] }
  0x16   : > { %v555_v23 = vcombine.high %v547_v15, %v547_v15  ;;  %v554_v26 = vrot.slane %v540_v24, %v1431_v6  ;;  %v794_v27 = vrot.slane %v774_v25, %v1431_v6  ;;  %v787_v28 = vcombine.high %v774_v25, %v774_v25  ;;  %v683_v31 = vld [vmem:[%s1436_s26] sm:$0x3f] }
  0x17   : > { %1253 = vmatprep.subr.msk.bf16.mxu0 %vm320_vm0, %v383_v17  ;;  %v700_v32 = vrot.slane %v683_v31, %v1431_v6  ;;  %v693_v34 = vcombine.high %v683_v31, %v683_v31  ;;  %v930_v35 = vld [vmem:[%s1436_s26] sm:$0x3f] }
  0x18   : > { %311 = vrot.lane.b32.xlu1 %v305_v16, %s1371_s28  ;;  %394 = vmatpush1.bf16.msra.mxu0 %v388_v18  ;;  %v802_v29 = vcombine.high %v794_v27, %v794_v27  ;;  %v801_v30 = vrot.slane %v787_v28, %v1431_v6  ;;  %v947_v37 = vrot.slane %v930_v35, %v1431_v6  ;;  %v1356_v16 = vld [vmem:[%s1550_s0 + $0x8] sm:$0xff]  }
  0x19   : > { %556 = vrot.lane.b32.xlu0 %v547_v15, %s1372_s29  ;;  %v708_v33 = vcombine.high %v700_v32, %v700_v32  ;;  %v707_v36 = vrot.slane %v693_v34, %v1431_v6  ;;  %v940_v38 = vcombine.high %v930_v35, %v930_v35 }
  0x1a   : > { %v955_v39 = vcombine.high %v947_v37, %v947_v37 }
  0x1b   : > { %1254 = vmatmul.mubr.msk.bf16.vlgmr.msra.gmra.mrb[0].mxu0 %vm316_vm1, %v1351_v21  ;;  %v954_v40 = vrot.slane %v940_v38, %v1431_v6 }
  0x1c   : > { %466 = vrot.lane.b32.xlu1 %v460_v20, %s1370_s27  ;;  %512 = vmatprep.mubr.bf16.mxu0 %v1369_v3 }
  0x1d   : > { %309 = vrot.lane.b32.xlu0 %v306_v19, %s1371_s28 }
  0x20   : > { %558 = vrot.lane.b32.xlu1 %v555_v23, %s1372_s29 }
  0x21   : > { %464 = vrot.lane.b32.xlu0 %v461_v22, %s1370_s27  ;;  %v1357_v22 = vld [vmem:[%s1550_s0 + $0x10] sm:$0xff]  }
  0x24   : > { %803 = vrot.lane.b32.xlu1 %v794_v27, %s1373_s8 }
  0x25   : > { %560 = vrot.lane.b32.xlu0 %v554_v26, %s1372_s29 }
  0x28   : > { %807 = vrot.lane.b32.xlu1 %v801_v30, %s1373_s8 }
  0x29   : > { %805 = vrot.lane.b32.xlu0 %v802_v29, %s1373_s8 }
  0x2c   : > { %624 = vrot.lane.b32.xlu1 %v555_v23, %s1374_s9 }
  0x2d   : > { %622 = vrot.lane.b32.xlu0 %v547_v15, %s1374_s9 }
  0x30   : > { %869 = vrot.lane.b32.xlu1 %v794_v27, %s1375_s10 }
  0x31   : > { %626 = vrot.lane.b32.xlu0 %v554_v26, %s1374_s9 }
  0x34   : > { %873 = vrot.lane.b32.xlu1 %v801_v30, %s1375_s10  ;;  %v1358_v30 = vld [vmem:[%s1550_s0 + $0x38] sm:$0xff]  }
  0x35   : > { %871 = vrot.lane.b32.xlu0 %v802_v29, %s1375_s10 }
  0x38   : > { %711 = vrot.lane.b32.xlu1 %v708_v33, %s1376_s11 }
  0x39   : > { %709 = vrot.lane.b32.xlu0 %v700_v32, %s1376_s11 }
  0x3c   : > { %956 = vrot.lane.b32.xlu1 %v947_v37, %s1377_s12 }
  0x3d   : > { %713 = vrot.lane.b32.xlu0 %v707_v36, %s1376_s11 }
  0x40   : > { %960 = vrot.lane.b32.xlu1 %v954_v40, %s1377_s12 }
  0x41   : > { %958 = vrot.lane.b32.xlu0 %v955_v39, %s1377_s12 }
  0x44   : > { %1071 = vperm.xlu1 %1344, %v1063_v42  }
  0x45   : > { %1066 = vperm.xlu0 %1343, %v1062_v41  }
  0x86   : > { %v463_v43 = vpop.permute.xlu1 %462 }
  0x87   : > { %v308_v44 = vpop.permute.xlu0 %307 }
  0x8a   : > { %v312_v46 = vpop.permute.xlu1 %311 }
  0x8b   : > { %v557_v45 = vpop.permute.xlu0 %556 }
  0x8e   : > { %v467_v48 = vpop.permute.xlu1 %466 }
  0x8f   : > { %v310_v47 = vpop.permute.xlu0 %309 }
  0x90   : > { %v315_v49 = vsel %vm313_vm2, %v310_v47, %v312_v46  ;;  %v314_v50 = vsel %vm313_vm2, %v308_v44, %v310_v47 }
  0x91   : > { %1249 = vmatprep.subr.msk.bf16.mxu1 %vm320_vm0, %v315_v49  ;;  %v322_v51 = vsel %vm320_vm0, %v314_v50, 0  ;;  %v1021_v49 = vld [vmem:[%s1551_s1] ss:$2 sm:$0x3]  ;;  %v1031_v50 = vsub.s32 1, %v1425_v4 }
  0x92   : > { %328 = vmatpush1.bf16.msra.mxu1 %v322_v51  ;;  %v559_v54 = vpop.permute.xlu1 %558 }
  0x93   : > { %v465_v53 = vpop.permute.xlu0 %464  ;;  %v563_v59 = vsel %vm562_vm4, %v557_v45, %v559_v54 }
  0x94   : > { %v469_v55 = vsel %vm468_vm3, %v463_v43, %v465_v53  ;;  %v470_v56 = vsel %vm468_vm3, %v465_v53, %v467_v48  ;;  %v569_v63 = vsel %vm320_vm0, %v563_v59, 0  ;;  %v1027_v48 = vsub.s32 0, %v1425_v4  ;;  %v1290_v53 = vld [vmem:[%s1551_s1 + $0x1] ss:$2 sm:$0x3] }
  0x95   : > { %v475_v57 = vsel %vm320_vm0, %v469_v55, 0  ;;  %1250 = vmatmul.mubr.msk.bf16.vlgmr.msra.gmra.mrb[0].mxu1 %vm316_vm1, %v1352_v52  ;;  %1258 = vmatprep.subr.msk.bf16.mxu0 %vm320_vm0, %v470_v56  ;;  %v1032_v52 = vrot.slane %v1021_v49, %v1031_v50 }
  0x96   : > { %481 = vmatpush1.bf16.msra.mxu0 %v475_v57  ;;  %606 = vmatprep.mubr.bf16.mxu1 %v1369_v3  ;;  %v804_v61 = vpop.permute.xlu1 %803  ;;  %v1028_v51 = vrot.slane %v1021_v49, %v1027_v48 }
  0x97   : > { %v561_v60 = vpop.permute.xlu0 %560 }
  0x98   : > { %v564_v62 = vsel %vm562_vm4, %v559_v54, %v561_v60  ;;  %v1047_v60 = vrot.slane %v1290_v53, %v1027_v48 }
  0x99   : > { %1259 = vmatmul.mubr.msk.bf16.vlgmr.msra.gmra.mrb[0].mxu0 %vm316_vm1, %v1353_v58  ;;  %1265 = vmatprep.subr.msk.bf16.mxu1 %vm320_vm0, %v564_v62 }
  0x9a   : > { %575 = vmatpush1.bf16.msra.mxu1 %v569_v63  ;;  %853 = vmatprep.mubr.bf16.mxu0 %v1369_v3  ;;  %v808_v2 = vpop.permute.xlu1 %807 }
  0x9b   : > { %v806_v1 = vpop.permute.xlu0 %805 }
  0x9c   : > { %v810_v5 = vsel %vm809_vm5, %v804_v61, %v806_v1  ;;  %v811_v6 = vsel %vm809_vm5, %v806_v1, %v808_v2 }
  0x9d   : > { %v816_v7 = vsel %vm320_vm0, %v810_v5, 0  ;;  %1266 = vmatmul.mubr.msk.bf16.vlgmr.msra.gmra.mrb[4].mxu1 %vm316_vm1, %v1354_v0  ;;  %1280 = vmatprep.subr.msk.bf16.mxu0 %vm320_vm0, %v811_v6  ;;  %v1051_v0 = vrot.slane %v1290_v53, %v1031_v50 }
  0x9e   : > { %822 = vmatpush1.bf16.msra.mxu0 %v816_v7  ;;  %672 = vmatprep.mubr.bf16.mxu1 %v1369_v3  ;;  %v625_v10 = vpop.permute.xlu1 %624 }
  0x9f   : > { %v623_v9 = vpop.permute.xlu0 %622 }
  0xa0   : > { %v629_v11 = vsel %vm628_vm6, %v623_v9, %v625_v10 }
  0xa1   : > { %1281 = vmatmul.mubr.msk.bf16.vlgmr.msra.gmra.mrb[4].mxu0 %vm316_vm1, %v1355_v8  ;;  %v635_v15 = vsel %vm320_vm0, %v629_v11, 0 }
  0xa2   : > { %919 = vmatprep.mubr.bf16.mxu0 %v1369_v3  ;;  %v870_v13 = vpop.permute.xlu1 %869 }
  0xa3   : > { %v627_v12 = vpop.permute.xlu0 %626 }
  0xa4   : > { %v630_v14 = vsel %vm628_vm6, %v625_v10, %v627_v12 }
  0xa5   : > { %1268 = vmatprep.subr.msk.bf16.mxu1 %vm320_vm0, %v630_v14 }
  0xa6   : > { %641 = vmatpush1.bf16.msra.mxu1 %v635_v15  ;;  %v874_v18 = vpop.permute.xlu1 %873 }
  0xa7   : > { %v872_v17 = vpop.permute.xlu0 %871 }
  0xa8   : > { %v876_v19 = vsel %vm875_vm7, %v870_v13, %v872_v17  ;;  %v877_v20 = vsel %vm875_vm7, %v872_v17, %v874_v18 }
  0xa9   : > { %v882_v21 = vsel %vm320_vm0, %v876_v19, 0  ;;  %1269 = vmatmul.mubr.msk.bf16.vlgmr.msra.gmra.mrb[4].mxu1 %vm316_vm1, %v1356_v16  ;;  %1283 = vmatprep.subr.msk.bf16.mxu0 %vm320_vm0, %v877_v20 }
  0xaa   : > { %888 = vmatpush1.bf16.msra.mxu0 %v882_v21  ;;  %759 = vmatprep.mubr.bf16.mxu1 %v1369_v3  ;;  %v712_v24 = vpop.permute.xlu1 %711 }
  0xab   : > { %v710_v23 = vpop.permute.xlu0 %709 }
  0xac   : > { %v716_v25 = vsel %vm715_vm8, %v710_v23, %v712_v24 }
  0xad   : > { %1284 = vmatmul.mubr.msk.bf16.vlgmr.msra.gmra.mrb[4].mxu0 %vm316_vm1, %v1357_v22  ;;  %v722_v29 = vsel %vm320_vm0, %v716_v25, 0 }
  0xae   : > { %1006 = vmatprep.mubr.bf16.mxu0 %v1369_v3  ;;  %v957_v27 = vpop.permute.xlu1 %956  ;;  %v1359_v3 = vld [vmem:[%s1550_s0 + $0x40] sm:$0xff]  }
  0xaf   : > { %v714_v26 = vpop.permute.xlu0 %713 }
  0xb0   : > { %v717_v28 = vsel %vm715_vm8, %v712_v24, %v714_v26 }
  0xb1   : > { %1273 = vmatprep.subr.msk.bf16.mxu1 %vm320_vm0, %v717_v28 }
  0xb2   : > { %728 = vmatpush1.bf16.msra.mxu1 %v722_v29  ;;  %v961_v32 = vpop.permute.xlu1 %960 }
  0xb3   : > { %v959_v31 = vpop.permute.xlu0 %958 }
  0xb4   : > { %v963_v33 = vsel %vm962_vm9, %v957_v27, %v959_v31  ;;  %v964_v34 = vsel %vm962_vm9, %v959_v31, %v961_v32 }
  0xb5   : > { %v969_v35 = vsel %vm320_vm0, %v963_v33, 0  ;;  %1274 = vmatmul.mubr.msk.bf16.vlgmr.msra.gmra.mrb[4].mxu1 %vm316_vm1, %v1358_v30  ;;  %1288 = vmatprep.subr.msk.bf16.mxu0 %vm320_vm0, %v964_v34 }
  0xb6   : > { %975 = vmatpush1.bf16.msra.mxu0 %v969_v35 }
  0xb9   : > { %1289 = vmatmul.mubr.msk.bf16.vlgmr.msra.gmra.mrb[4].mxu0 %vm316_vm1, %v1359_v3 }
  0xc3   : > { %v1072_v16 = vpop.permute.xlu1 %1071 }
  0xc4   : > { %v1067_v10 = vpop.permute.xlu0 %1066 }
 0x168   : > { %v361_v36 = vpop.f32.mrb[0].mxu1 }
 0x169   : > { %v363_v37 = vpop.f32.mrb[1].mxu1 }
 0x16a   : > { %v365_v38 = vpop.f32.mrb[2].mxu1 }
 0x16b   : > { %v367_v39 = vpop.f32.mrb[3].mxu1 }
 0x16c   : > { %v514_v40 = vpop.f32.mrb[0].mxu0 }
 0x16d   : > { %v1300_v41 = vadd.f32 %v514_v40, %v361_v36  ;;  %v516_v42 = vpop.f32.mrb[1].mxu0 }
 0x16e   : > { %v1301_v43 = vadd.f32 %v516_v42, %v363_v37  ;;  %v518_v44 = vpop.f32.mrb[2].mxu0 }
 0x16f   : > { %v1302_v45 = vadd.f32 %v518_v44, %v365_v38  ;;  %v520_v46 = vpop.f32.mrb[3].mxu0  ;;  %v1035_v54 = vmul.f32 %v1300_v41, %v1028_v51 }
 0x170   : > { %v1303_v47 = vadd.f32 %v520_v46, %v367_v39  ;;  %v1036_v56 = vmul.f32 %v1301_v43, %v1032_v52 }
 0x171   : > { %v1037_v59 = vmul.f32 %v1302_v45, %v1028_v51 }
 0x172   : > { %v1038_v63 = vmul.f32 %v1303_v47, %v1032_v52 }
 0x188   : > { %v761_v55 = vpop.f32.mrb[4].mxu1 }
 0x189   : > { %v1039_v57 = vadd.f32 %v1035_v54, %v761_v55  ;;  %v763_v58 = vpop.f32.mrb[5].mxu1 }
 0x18a   : > { %v1040_v61 = vadd.f32 %v1036_v56, %v763_v58  ;;  %v765_v62 = vpop.f32.mrb[6].mxu1 }
 0x18b   : > { %v1041_v1 = vadd.f32 %v1037_v59, %v765_v62  ;;  %v767_v4 = vpop.f32.mrb[7].mxu1 }
 0x18c   : > { %v1042_v2 = vadd.f32 %v1038_v63, %v767_v4  ;;  %v1008_v5 = vpop.f32.mrb[4].mxu0 }
 0x18d   : > { %v1054_v6 = vmul.f32 %v1047_v60, %v1008_v5  ;;  %v1010_v7 = vpop.f32.mrb[5].mxu0 }
 0x18e   : > { %v1055_v8 = vmul.f32 %v1051_v0, %v1010_v7  ;;  %v1012_v9 = vpop.f32.mrb[6].mxu0 }
 0x18f   : > { %v1058_v11 = vadd.f32 %v1054_v6, %v1039_v57  ;;  %v1056_v12 = vmul.f32 %v1047_v60, %v1012_v9  ;;  %v1014_v13 = vpop.f32.mrb[7].mxu0 }
 0x190   : > { %v1059_v14 = vadd.f32 %v1055_v8, %v1040_v61  ;;  %v1057_v15 = vmul.f32 %v1051_v0, %v1014_v13 }
 0x191   : > { %v1060_v17 = vadd.f32 %v1056_v12, %v1041_v1  ;;  %v1074_v18 = vadd.f32 %v1067_v10, %v1058_v11 }
 0x192   : > { %v1061_v19 = vadd.f32 %v1057_v15, %v1042_v2  ;;  %v1075_v20 = vadd.f32 %v1067_v10, %v1059_v14 }
 0x193   : > { %v1076_v21 = vadd.f32 %v1072_v16, %v1060_v17  ;;  %v1087_v22 = vmul.f32 %v1074_v18, %v1074_v18 }
 0x194   : > { %v1298_v23 = vpack.c.bf16 %v1075_v20, %v1074_v18  ;;  %v1077_v24 = vadd.f32 %v1072_v16, %v1061_v19  ;;  %v1078_v25 = vadd.f32 %v1075_v20, %v1074_v18  ;;  %v1088_v26 = vmul.f32 %v1075_v20, %v1075_v20 }
 0x195   : > { %v1089_v27 = vmul.f32 %v1076_v21, %v1076_v21 }
 0x196   : > { %v1299_v28 = vpack.c.bf16 %v1077_v24, %v1076_v21  ;;  %1079 = vadd.xlane.f32.xlu1 %v1078_v25  ;;  %v1081_v29 = vadd.f32 %v1077_v24, %v1076_v21  ;;  %v1090_v30 = vmul.f32 %v1077_v24, %v1077_v24  ;;  %v1091_v31 = vadd.f32 %v1088_v26, %v1087_v22 }
 0x197   : > { %1111 = vst [vmem:[%s266_s18] sm:$0xff] %v1298_v23 }
 0x198   : > { %1082 = vadd.xlane.f32.xlu0 %v1081_v29  ;;  %v1094_v32 = vadd.f32 %v1090_v30, %v1089_v27  ;;  %1112 = vst [vmem:[%s266_s18 + $0x8] sm:$0xff] %v1299_v28 }
 0x19a   : > { %1095 = vadd.xlane.f32.xlu1 %v1094_v32 }
 0x19c   : > { %1092 = vadd.xlane.f32.xlu0 %v1091_v31 }
 0x223   : > { %v1080_v33 = vpop.xlane.xlu1 %1079 }
 0x224   : > { %1085 = vst.msk [vmem:[%s271_s20] sm:$0xff] %vm1084_vm10, %v1080_v33 }
 0x225   : > { %v1083_v34 = vpop.xlane.xlu0 %1082 }
 0x226   : > { %1086 = vst.msk [vmem:[%s271_s20 + $0x8] sm:$0xff] %vm1084_vm10, %v1083_v34 }
 0x227   : > { %v1096_v35 = vpop.xlane.xlu1 %1095 }
 0x228   : > { %1098 = vst.msk [vmem:[%s276_s25 + $0x8] sm:$0xff] %vm1084_vm10, %v1096_v35 }
 0x229   : > { %v1093_v3 = vpop.xlane.xlu0 %1092 }
 0x22a   : > { %1097 = vst.msk [vmem:[%s276_s25] sm:$0xff] %vm1084_vm10, %v1093_v3 }
 0x22b PF: > { %s17_s21 = sadd.s32 1, %s1366_s21  }
 0x22c   : > { %p14_p4 = scmp.ge.s32.totalorder %s17_s21, 4  }
 0x22e   :  { %16 = sbr.rel (!%p14_p4) target bundleno = 1 (0x1), region = 99 }

// kernel: db_upsample.5
= control target key start
LH: loop header
LB: loop body
LE: loop exit
PB: predicated region body
PF: predicated region fallthrough
CT: control target
= control target key end

     0   :  { %s1227_s27 = smov 0   ;;  %s1324_s0 = inlined_call_operand.vmem [shape: bf16[9,4,16], index: 0, kind: input, shape index: {}]   ;;  %s1325_s1 = inlined_call_operand.vmem [shape: f32[2,256], index: 1, kind: input, shape index: {}]   ;;  %s1326_s2 = inlined_call_operand.vmem [shape: f32[4,1], index: 2, kind: input, shape index: {}]   ;;  %s1327_s3 = inlined_call_operand.vmem [shape: bf16[2,16,256], index: 3, kind: input, shape index: {}]   ;;  %s1328_s4 = inlined_call_operand.vmem [shape: f32[16,1], index: 4, kind: input, shape index: {}]   ;;  %s1329_s5 = inlined_call_operand.vmem [shape: f32[16,1], index: 5, kind: input, shape index: {}]   ;;  %s1330_s6 = inlined_call_operand.vmem [shape: bf16[2,4,256], index: 6, kind: output, shape index: {0}]   ;;  %s1331_s7 = inlined_call_operand.vmem [shape: f32[2,4,1], index: 7, kind: output, shape index: {1}]   ;;  %s1332_s8 = inlined_call_operand.vmem [shape: f32[2,4,1], index: 8, kind: output, shape index: {2}]  }
   0x1 LB: > { %s1095_s28 = sadd.s32 4294967295, %s1170_s27   ;;  %p1099_p0 = scmp.ge.s32.totalorder %s1170_s27, 1  ;;  %s1170_s27 = sphi %s1227_s27, %s19_s27  }
   0x2   : > { %p267_p1 = scmp.lt.s32.totalorder %s1170_s27, 3 }
   0x4   : > { %p268_p2 = pnand %p1099_p0, %p267_p1 }
   0x5   : > { %v350_v0 = vld [vmem:[%s1329_s5] sm:$0xff] (!%p268_p2)  ;;  %v1172_v2 = vmov (!%p268_p2), 0   ;;  %v351_v3 = vld [vmem:[%s1329_s5 + $0x8] sm:$0xff] (!%p268_p2)  ;;  %p309_p3 = scmp.lt.s32.totalorder (!%p268_p2), %s1095_s28, 1  ;;  %s1173_s19 = smov (!%p268_p2), 17   ;;  %vm381_vm0 = vcmask (!%p268_p2), 138240  }
   0x6   : > { %271 = sbr.rel (%p268_p2) target bundleno = 802 (0x322), region = 44  ;;  %v334_v1 = vld [vmem:[%s1328_s4] sm:$0xff] (!%p268_p2)  ;;  %1163 = vset.pattern.permute.xlu1 (!%p268_p2), %v1172_v2  ;;  %370 = vst [vmem:[#allocation2] sm:$0xff] (!%p268_p2), %v1172_v2  ;;  %372 = vst [vmem:[#allocation2 + $0x10] sm:$0xff] (!%p268_p2), %v1172_v2  ;;  %1162 = vset.pattern.permute.xlu0 (!%p268_p2), %v1172_v2  ;;  %v335_v4 = vld [vmem:[%s1328_s4 + $0x8] sm:$0xff] (!%p268_p2)  ;;  %vm386_vm1 = vcmask (!%p268_p2), 1047688  }
   0x7   : > { %354 = vperm.xlu1 (!%p268_p2), %1163, %v350_v0   ;;  %338 = vperm.xlu0 (!%p268_p2), %1162, %v334_v1   ;;  %s1174_s20 = smov (!%p268_p2), 96   ;;  %v393_v34 = vld [vmem:[%s1324_s0] sm:$0x3] (!%p268_p2)  ;;  %vm413_vm2 = vcmask (!%p268_p2), 130048   ;;  %s1175_s23 = smov (!%p268_p2), 112   ;;  %vm510_vm3 = vcmask (!%p268_p2), 785408  }
   0x8   : > { %493 = vmatprep.mubr.bf16.mxu0 (!%p268_p2), %v1172_v2  ;;  %449 = vmatprep.mubr.bf16.mxu1 (!%p268_p2), %v1172_v2  ;;  %s1176_s24 = smov (!%p268_p2), 110   ;;  %s1177_s25 = smov (!%p268_p2), 111   ;;  %v940_v35 = vld [vmem:[%s1326_s2] sm:$0xf] (!%p268_p2)  ;;  %vm408_vm4 = vcmask (!%p268_p2), 916480   ;;  %vm744_vm5 = vcmask (!%p268_p2), 900096  }
   0x9   : > { %s1178_s26 = smov (!%p268_p2), 126   ;;  %s1179_s29 = smov (!%p268_p2), 127   ;;  %v1109_v46 = vld [vmem:[%s1324_s0 + $0xc] sm:$0x3] (!%p268_p2)  ;;  %v1106_v51 = vld [vmem:[%s1324_s0 + $0x6] sm:$0x3] (!%p268_p2) }
   0xa   : > { %s1180_s30 = smov (!%p268_p2), 95   ;;  %s1181_s9 = smov (!%p268_p2), 94   ;;  %vm571_vm6 = vcmask (!%p268_p2), 908288   ;;  %v1118_v56 = vld [vmem:[%s1324_s0 + $0xa] sm:$0x3] (!%p268_p2)  ;;  %vm626_vm7 = vcmask (!%p268_p2), 1039360  }
   0xb   : > { %359 = vperm.xlu1 (!%p268_p2), %1163, %v351_v3   ;;  %343 = vperm.xlu0 (!%p268_p2), %1162, %v335_v4   ;;  %v1112_v61 = vld [vmem:[%s1324_s0 + $0x8] sm:$0x3] (!%p268_p2)  ;;  %vm799_vm8 = vcmask (!%p268_p2), 1031168   ;;  %vm683_vm9 = vcmask (!%p268_p2), 777216   ;;  %vm856_vm10 = vcmask (!%p268_p2), 769024   ;;  %vm948_vm11 = vcmask (!%p268_p2), 1043456  }
   0xc   : > { %vm954_vm12 = vcmask (!%p268_p2), 3072  }
   0xd   : > { %s1334_s28 = smov (!%p309_p3, %s1095_s28), 1 }
   0xe   : > { %s1128_s15 = sshll.u32 %s1334_s28, 4  ;;  %s1129_s12 = sshll.u32 %s1334_s28, 2 }
   0xf   : > { %s313_s18 = scalar_lea.vmem %s1327_s3, %s1128_s15  ;;  %s318_s15 = scalar_lea.vmem %s1330_s6, %s1129_s12 }
  0x10   : > { %v328_v5 = vld [vmem:[%s313_s18] sm:$0xff]  ;;  %v329_v8 = vld [vmem:[%s313_s18 + $0x8] sm:$0xff]  ;;  %s322_s17 = scalar_lea.vmem %s1331_s7, %s1129_s12 }
  0x11   : > { %v330_v6 = vunpack.c.l.bf16 %v328_v5  ;;  %v331_v7 = vunpack.c.h.bf16 %v328_v5  ;;  %v332_v13 = vunpack.c.l.bf16 %v329_v8  ;;  %v333_v14 = vunpack.c.h.bf16 %v329_v8  ;;  %v1117_v8 = vld [vmem:[%s1324_s0 + $0x4] sm:$0x3] }
  0x86   : > { %v355_v9 = vpop.permute.xlu1 %354  ;;  %v339_v10 = vpop.permute.xlu0 %338 }
  0x87   : > { %v346_v11 = vmul.f32 %v339_v10, %v330_v6  ;;  %v347_v12 = vmul.f32 %v339_v10, %v331_v7  ;;  %v1111_v7 = vld [vmem:[%s1324_s0 + $0x2] sm:$0x3] }
  0x89   : > { %v362_v16 = vadd.f32 %v355_v9, %v346_v11  ;;  %v363_v17 = vadd.f32 %v355_v9, %v347_v12 }
  0x8a   : > { %v344_v15 = vpop.permute.xlu0 %343  ;;  %v360_v20 = vpop.permute.xlu1 %359 }
  0x8b   : > { %v348_v18 = vmul.f32 %v344_v15, %v332_v13  ;;  %v349_v19 = vmul.f32 %v344_v15, %v333_v14  ;;  %v366_v23 = vmax.f32 %v362_v16, 0.0  ;;  %v367_v24 = vmax.f32 %v363_v17, 0.0  ;;  %v1115_v15 = vld [vmem:[%s1324_s0 + $0xe] sm:$0x3] }
  0x8d   : > { %v364_v21 = vadd.f32 %v360_v20, %v348_v18  ;;  %v365_v22 = vadd.f32 %v360_v20, %v349_v19 }
  0x8f   : > { %v368_v25 = vmax.f32 %v364_v21, 0.0  ;;  %v369_v26 = vmax.f32 %v365_v22, 0.0 }
  0x91   : > { %v374_v27 = vpack.c.bf16 %v369_v26, %v367_v24  ;;  %v373_v28 = vpack.c.bf16 %v368_v25, %v366_v23 }
  0x93   : > { %379 = vrot.lane.b32.xlu1 %v374_v27, %s1173_s19  ;;  %377 = vrot.lane.b32.xlu0 %v373_v28, %s1173_s19 }
 0x105   : > { %v380_v29 = vpop.permute.xlu1 %379  ;;  %v378_v30 = vpop.permute.xlu0 %377 }
 0x106   : > { %390 = vst.msk [vmem:[#allocation2 + $0x10] sm:$0xff] %vm381_vm0, %v380_v29  ;;  %v382_v31 = vsel %vm381_vm0, %v378_v30, %v380_v29 }
 0x107   : > { %387 = vst.msk [vmem:[#allocation2] sm:$0xff] %vm386_vm1, %v378_v30  ;;  %461 = vmatprep.subr.bf16.mxu0 %v382_v31 }
 0x10d   : > { %v396_v32 = vld [vmem:[#allocation2 + $0x10] sm:$0xff] }
 0x10e   : > { %v394_v33 = vld [vmem:[#allocation2] sm:$0xff]  ;;  %508 = vrot.lane.b32.xlu1 %v396_v32, %s1174_s20 }
 0x10f   : > { %504 = vrot.lane.b32.xlu0 %v394_v33, %s1174_s20  ;;  %462 = vmatpush1.bf16.msra.mxu0 %v394_v33 }
 0x112   : > { %402 = vrot.lane.b32.xlu1 %v394_v33, %s1175_s23  ;;  %1108 = vmatmul.mubr.msk.bf16.vlgmr.msra.gmra.mrb[0].mxu0 %vm413_vm2, %v393_v34 }
 0x113   : > { %406 = vrot.lane.b32.xlu0 %v396_v32, %s1175_s23  ;;  %550 = vmatprep.mubr.bf16.mxu0 %v1172_v2 }
 0x116   : > { %742 = vrot.lane.b32.xlu1 %v396_v32, %s1176_s24 }
 0x117   : > { %738 = vrot.lane.b32.xlu0 %v394_v33, %s1176_s24 }
 0x11a   : > { %565 = vrot.lane.b32.xlu1 %v394_v33, %s1177_s25 }
 0x11b   : > { %506 = vrot.lane.b32.xlu0 %v382_v31, %s1174_s20  ;;  %s326_s20 = scalar_lea.vmem %s1332_s8, %s1129_s12 }
 0x11e   : > { %404 = vrot.lane.b32.xlu1 %v382_v31, %s1175_s23 }
 0x11f   : > { %569 = vrot.lane.b32.xlu0 %v396_v32, %s1177_s25 }
 0x122   : > { %797 = vrot.lane.b32.xlu1 %v396_v32, %s1178_s26 }
 0x123   : > { %740 = vrot.lane.b32.xlu0 %v382_v31, %s1176_s24 }
 0x126   : > { %567 = vrot.lane.b32.xlu1 %v382_v31, %s1177_s25 }
 0x127   : > { %793 = vrot.lane.b32.xlu0 %v394_v33, %s1178_s26 }
 0x12a   : > { %620 = vrot.lane.b32.xlu1 %v394_v33, %s1179_s29 }
 0x12b   : > { %624 = vrot.lane.b32.xlu0 %v396_v32, %s1179_s29 }
 0x12e   : > { %622 = vrot.lane.b32.xlu1 %v382_v31, %s1179_s29 }
 0x12f   : > { %795 = vrot.lane.b32.xlu0 %v382_v31, %s1178_s26 }
 0x132   : > { %681 = vrot.lane.b32.xlu1 %v396_v32, %s1180_s30 }
 0x133   : > { %677 = vrot.lane.b32.xlu0 %v394_v33, %s1180_s30 }
 0x136   : > { %852 = vrot.lane.b32.xlu1 %v382_v31, %s1181_s9 }
 0x137   : > { %679 = vrot.lane.b32.xlu0 %v382_v31, %s1180_s30  ;;  %v911_v31 = vlaneseq }
 0x13a   : > { %850 = vrot.lane.b32.xlu1 %v394_v33, %s1181_s9 }
 0x13b   : > { %854 = vrot.lane.b32.xlu0 %v396_v32, %s1181_s9 }
 0x13f   : > { %943 = vperm.xlu0 %1162, %v940_v35   ;;  %v912_v35 = vshrl.u32 %v911_v31, 7 }
 0x180   : > { %v509_v36 = vpop.permute.xlu1 %508 }
 0x181   : > { %v505_v37 = vpop.permute.xlu0 %504 }
 0x184   : > { %v403_v38 = vpop.permute.xlu1 %402 }
 0x185   : > { %v407_v39 = vpop.permute.xlu0 %406 }
 0x188   : > { %v743_v40 = vpop.permute.xlu1 %742 }
 0x189   : > { %v739_v41 = vpop.permute.xlu0 %738 }
 0x18c   : > { %v566_v42 = vpop.permute.xlu1 %565 }
 0x18d   : > { %v507_v43 = vpop.permute.xlu0 %506 }
 0x18e   : > { %v511_v44 = vsel %vm510_vm3, %v505_v37, %v507_v43  ;;  %v512_v45 = vsel %vm510_vm3, %v507_v43, %v509_v36  ;;  %v913_v37 = vsub.s32 0, %v912_v35 }
 0x18f   : > { %518 = vmatprep.subr.bf16.mxu0 %v512_v45 }
 0x190   : > { %519 = vmatpush1.bf16.msra.mxu0 %v511_v44  ;;  %v405_v47 = vpop.permute.xlu1 %404 }
 0x191   : > { %v570_v48 = vpop.permute.xlu0 %569  ;;  %v410_v49 = vsel %vm408_vm4, %v405_v47, %v407_v39  ;;  %v409_v50 = vsel %vm408_vm4, %v403_v38, %v405_v47  ;;  %v1123_v47 = vld [vmem:[%s1325_s1 + $0x1] ss:$2 sm:$0x3] }
 0x192   : > { %417 = vmatprep.subr.bf16.mxu1 %v410_v49 }
 0x193   : > { %1110 = vmatmul.mubr.msk.bf16.vlgmr.msra.gmra.mrb[0].mxu0 %vm413_vm2, %v1109_v46  ;;  %418 = vmatpush1.bf16.msra.mxu1 %v409_v50 }
 0x194   : > { %784 = vmatprep.mubr.bf16.mxu0 %v1172_v2  ;;  %v798_v52 = vpop.permute.xlu1 %797 }
 0x195   : > { %v741_v53 = vpop.permute.xlu0 %740 }
 0x196   : > { %v745_v54 = vsel %vm744_vm5, %v739_v41, %v741_v53  ;;  %v746_v55 = vsel %vm744_vm5, %v741_v53, %v743_v40  ;;  %1107 = vmatmul.mubr.msk.bf16.vlgmr.msra.gmra.mrb[0].mxu1 %vm413_vm2, %v1106_v51  ;;  %v907_v40 = vld [vmem:[%s1325_s1] ss:$2 sm:$0x3]  ;;  %v917_v41 = vsub.s32 1, %v912_v35 }
 0x197   : > { %752 = vmatprep.subr.bf16.mxu0 %v746_v55  ;;  %611 = vmatprep.mubr.bf16.mxu1 %v1172_v2  ;;  %v914_v45 = vrot.slane %v907_v40, %v913_v37 }
 0x198   : > { %753 = vmatpush1.bf16.msra.mxu0 %v745_v54  ;;  %v568_v57 = vpop.permute.xlu1 %567  ;;  %v918_v46 = vrot.slane %v907_v40, %v917_v41  ;;  %v933_v55 = vrot.slane %v1123_v47, %v917_v41 }
 0x199   : > { %v794_v58 = vpop.permute.xlu0 %793  ;;  %v572_v59 = vsel %vm571_vm6, %v566_v42, %v568_v57  ;;  %v573_v60 = vsel %vm571_vm6, %v568_v57, %v570_v48 }
 0x19a   : > { %579 = vmatprep.subr.bf16.mxu1 %v573_v60 }
 0x19b   : > { %1119 = vmatmul.mubr.msk.bf16.vlgmr.msra.gmra.mrb[4].mxu0 %vm413_vm2, %v1118_v56  ;;  %580 = vmatpush1.bf16.msra.mxu1 %v572_v59 }
 0x19c   : > { %839 = vmatprep.mubr.bf16.mxu0 %v1172_v2  ;;  %v621_v62 = vpop.permute.xlu1 %620 }
 0x19d   : > { %v625_v63 = vpop.permute.xlu0 %624 }
 0x19e   : > { %1113 = vmatmul.mubr.msk.bf16.vlgmr.msra.gmra.mrb[4].mxu1 %vm413_vm2, %v1112_v61 }
 0x19f   : > { %666 = vmatprep.mubr.bf16.mxu1 %v1172_v2 }
 0x1a0   : > { %v623_v0 = vpop.permute.xlu1 %622 }
 0x1a1   : > { %v796_v1 = vpop.permute.xlu0 %795  ;;  %v627_v3 = vsel %vm626_vm7, %v621_v62, %v623_v0  ;;  %v628_v5 = vsel %vm626_vm7, %v623_v0, %v625_v63 }
 0x1a2   : > { %v800_v4 = vsel %vm799_vm8, %v794_v58, %v796_v1  ;;  %v801_v6 = vsel %vm799_vm8, %v796_v1, %v798_v52  ;;  %634 = vmatprep.subr.bf16.mxu1 %v628_v5  ;;  %v929_v52 = vrot.slane %v1123_v47, %v913_v37 }
 0x1a3   : > { %807 = vmatprep.subr.bf16.mxu0 %v801_v6  ;;  %635 = vmatpush1.bf16.msra.mxu1 %v627_v3 }
 0x1a4   : > { %808 = vmatpush1.bf16.msra.mxu0 %v800_v4  ;;  %v682_v9 = vpop.permute.xlu1 %681 }
 0x1a5   : > { %v678_v10 = vpop.permute.xlu0 %677 }
 0x1a6   : > { %1114 = vmatmul.mubr.msk.bf16.vlgmr.msra.gmra.mrb[8].mxu1 %vm413_vm2, %v1111_v7 }
 0x1a7   : > { %1120 = vmatmul.mubr.msk.bf16.vlgmr.msra.gmra.mrb[4].mxu0 %vm413_vm2, %v1117_v8  ;;  %723 = vmatprep.mubr.bf16.mxu1 %v1172_v2 }
 0x1a8   : > { %896 = vmatprep.mubr.bf16.mxu0 %v1172_v2  ;;  %v853_v11 = vpop.permute.xlu1 %852  ;;  %v1121_v2 = vld [vmem:[%s1324_s0 + $0x10] sm:$0x3] }
 0x1a9   : > { %v680_v12 = vpop.permute.xlu0 %679 }
 0x1aa   : > { %v684_v13 = vsel %vm683_vm9, %v678_v10, %v680_v12  ;;  %v685_v14 = vsel %vm683_vm9, %v680_v12, %v682_v9 }
 0x1ab   : > { %691 = vmatprep.subr.bf16.mxu1 %v685_v14 }
 0x1ac   : > { %692 = vmatpush1.bf16.msra.mxu1 %v684_v13  ;;  %v851_v16 = vpop.permute.xlu1 %850 }
 0x1ad   : > { %v855_v17 = vpop.permute.xlu0 %854  ;;  %v857_v18 = vsel %vm856_vm10, %v851_v16, %v853_v11 }
 0x1ae   : > { %v858_v19 = vsel %vm856_vm10, %v853_v11, %v855_v17 }
 0x1af   : > { %1116 = vmatmul.mubr.msk.bf16.vlgmr.msra.gmra.mrb[12].mxu1 %vm413_vm2, %v1115_v15  ;;  %864 = vmatprep.subr.bf16.mxu0 %v858_v19 }
 0x1b0   : > { %865 = vmatpush1.bf16.msra.mxu0 %v857_v18 }
 0x1b3   : > { %1122 = vmatmul.mubr.msk.bf16.vlgmr.msra.gmra.mrb[4].mxu0 %vm413_vm2, %v1121_v2 }
 0x1be   : > { %v944_v4 = vpop.permute.xlu0 %943 }
 0x266   : > { %v552_v20 = vpop.f32.mrb[0].mxu0 }
 0x267   : > { %v554_v21 = vpop.f32.mrb[1].mxu0 }
 0x268   : > { %v556_v22 = vpop.f32.mrb[2].mxu0 }
 0x269   : > { %v557_v23 = vpop.f32.mrb[3].mxu0  ;;  %v451_v24 = vpop.f32.mrb[0].mxu1 }
 0x26a   : > { %v1130_v25 = vadd.f32 %v552_v20, %v451_v24  ;;  %v453_v26 = vpop.f32.mrb[1].mxu1 }
 0x26b   : > { %v1131_v27 = vadd.f32 %v554_v21, %v453_v26  ;;  %v455_v28 = vpop.f32.mrb[2].mxu1 }
 0x26c   : > { %v456_v29 = vpop.f32.mrb[3].mxu1  ;;  %v921_v49 = vmul.f32 %v1130_v25, %v914_v45 }
 0x26d   : > { %v922_v53 = vmul.f32 %v1131_v27, %v918_v46 }
 0x271   : > { %v613_v30 = vpop.f32.mrb[4].mxu1 }
 0x272   : > { %v615_v32 = vpop.f32.mrb[5].mxu1 }
 0x273   : > { %v617_v33 = vpop.f32.mrb[6].mxu1 }
 0x274   : > { %v618_v34 = vpop.f32.mrb[7].mxu1 }
 0x279   : > { %v668_v36 = vpop.f32.mrb[8].mxu1 }
 0x27a   : > { %v669_v38 = vadd.f32 %v668_v36, %v613_v30  ;;  %v670_v39 = vpop.f32.mrb[9].mxu1 }
 0x27b   : > { %v671_v42 = vadd.f32 %v670_v39, %v615_v32  ;;  %v672_v43 = vpop.f32.mrb[10].mxu1 }
 0x27c   : > { %v673_v44 = vpop.f32.mrb[11].mxu1 }
 0x282   : > { %v725_v48 = vpop.f32.mrb[12].mxu1 }
 0x283   : > { %v732_v50 = vadd.f32 %v725_v48, %v669_v38  ;;  %v727_v51 = vpop.f32.mrb[13].mxu1 }
 0x284   : > { %v733_v54 = vadd.f32 %v727_v51, %v671_v42  ;;  %v729_v56 = vpop.f32.mrb[14].mxu1 }
 0x285   : > { %v923_v57 = vadd.f32 %v921_v49, %v732_v50  ;;  %v730_v58 = vpop.f32.mrb[15].mxu1 }
 0x286   : > { %v924_v59 = vadd.f32 %v922_v53, %v733_v54  ;;  %v898_v60 = vpop.f32.mrb[4].mxu0 }
 0x287   : > { %v936_v61 = vmul.f32 %v929_v52, %v898_v60  ;;  %v900_v62 = vpop.f32.mrb[5].mxu0 }
 0x288   : > { %v937_v63 = vmul.f32 %v933_v55, %v900_v62  ;;  %v902_v0 = vpop.f32.mrb[6].mxu0 }
 0x289   : > { %v938_v1 = vadd.f32 %v936_v61, %v923_v57  ;;  %v903_v3 = vpop.f32.mrb[7].mxu0 }
 0x28a   : > { %v939_v5 = vadd.f32 %v937_v63, %v924_v59 }
 0x28b   : > { %v946_v6 = vadd.f32 %v944_v4, %v938_v1 }
 0x28c   : > { %v947_v7 = vadd.f32 %v944_v4, %v939_v5 }
 0x28d   : > { %v949_v8 = vsel %vm948_vm11, %v946_v6, 0.0  ;;  %v956_v9 = vmul.f32 %v946_v6, %v946_v6 }
 0x28e   : > { %v1124_v10 = vpack.c.bf16 %v947_v7, %v946_v6  ;;  %v950_v11 = vsel %vm948_vm11, %v947_v7, 0.0  ;;  %v957_v12 = vmul.f32 %v947_v7, %v947_v7 }
 0x28f   : > { %v951_v13 = vadd.f32 %v950_v11, %v949_v8  ;;  %v958_v14 = vsel %vm948_vm11, %v956_v9, 0.0 }
 0x290   : > { %v959_v15 = vsel %vm948_vm11, %v957_v12, 0.0  ;;  %1125 = vst.sshfl [vmem:[%s318_s15] sm:$0x33 pattern:$0x76325410] %v1124_v10 }
 0x291   : > { %952 = vadd.xlane.f32.xlu1 %v951_v13  ;;  %v960_v16 = vadd.f32 %v959_v15, %v958_v14 }
 0x293   : > { %961 = vadd.xlane.f32.xlu0 %v960_v16 }
 0x31e   : > { %v953_v17 = vpop.xlane.xlu1 %952 }
 0x31f   : > { %955 = vst.msk [vmem:[%s322_s17] sm:$0xf] %vm954_vm12, %v953_v17 }
 0x320   : > { %v962_v18 = vpop.xlane.xlu0 %961 }
 0x321   : > { %963 = vst.msk [vmem:[%s326_s20] sm:$0xf] %vm954_vm12, %v962_v18 }
 0x322 PF: > { %s19_s27 = sadd.s32 1, %s1170_s27  }
 0x323   : > { %p16_p4 = scmp.ge.s32.totalorder %s19_s27, 4  }
 0x325   :  { %18 = sbr.rel (!%p16_p4) target bundleno = 1 (0x1), region = 107 }

// kernel: db_upsample.6
= control target key start
LH: loop header
LB: loop body
LE: loop exit
PB: predicated region body
PF: predicated region fallthrough
CT: control target
= control target key end

     0   :  { %s1612_s30 = smov 0   ;;  %s1753_s0 = inlined_call_operand.vmem [shape: bf16[9,16,4], index: 0, kind: input, shape index: {}]   ;;  %s1754_s1 = inlined_call_operand.vmem [shape: f32[2,256], index: 1, kind: input, shape index: {}]   ;;  %s1755_s2 = inlined_call_operand.vmem [shape: f32[16,1], index: 2, kind: input, shape index: {}]   ;;  %s1756_s3 = inlined_call_operand.vmem [shape: bf16[2,4,256], index: 3, kind: input, shape index: {}]   ;;  %s1757_s4 = inlined_call_operand.vmem [shape: f32[4,1], index: 4, kind: input, shape index: {}]   ;;  %s1758_s5 = inlined_call_operand.vmem [shape: f32[4,1], index: 5, kind: input, shape index: {}]   ;;  %s1759_s6 = inlined_call_operand.vmem [shape: f32[2,4,256], index: 6, kind: input, shape index: {}]   ;;  %s1760_s7 = inlined_call_operand.vmem [shape: bf16[2,16,256], index: 7, kind: output, shape index: {0}]   ;;  %s1761_s8 = inlined_call_operand.vmem [shape: f32[2,16,1], index: 8, kind: output, shape index: {1}]   ;;  %s1762_s9 = inlined_call_operand.vmem [shape: f32[2,16,1], index: 9, kind: output, shape index: {2}]  }
   0x1 LB: > { %s1409_s10 = sadd.s32 4294967295, %s1548_s30   ;;  %p1413_p0 = scmp.ge.s32.totalorder %s1548_s30, 1  ;;  %s1548_s30 = sphi %s1612_s30, %s20_s30  }
   0x2   : > { %p302_p1 = scmp.lt.s32.totalorder %s1548_s30, 3 }
   0x4   : > { %p303_p2 = pnand %p1413_p0, %p302_p1 }
   0x5   : > { %v381_v0 = vld [vmem:[%s1757_s4] sm:$0xf] (!%p303_p2)  ;;  %v1550_v1 = vmov (!%p303_p2), 0   ;;  %p353_p3 = scmp.lt.s32.totalorder (!%p303_p2), %s1409_s10, 1  ;;  %v1551_v3 = vmov (!%p303_p2), 839922192   ;;  %v389_v5 = vlaneseq (!%p303_p2) }
   0x6   : > { %306 = sbr.rel (%p303_p2) target bundleno = 816 (0x330), region = 48  ;;  %1525 = vset.pattern.permute.xlu0 (!%p303_p2), %v1550_v1  ;;  %413 = vst [vmem:[#allocation2] sm:$0x3f] (!%p303_p2), %v1550_v1  ;;  %588 = vmatprep.mubr.bf16.mxu0 (!%p303_p2), %v1550_v1  ;;  %v395_v2 = vld [vmem:[%s1758_s5] sm:$0xf] (!%p303_p2)  ;;  %v387_v4 = vunpack.c.l.s4 (!%p303_p2), %v1551_v3  ;;  %s1553_s23 = smov (!%p303_p2), 17  }
   0x7   : > { %384 = vperm.xlu0 (!%p303_p2), %1525, %v381_v0   ;;  %522 = vmatprep.mubr.bf16.mxu1 (!%p303_p2), %v1550_v1  ;;  %v1634_v7 = vshrl.u32 (!%p303_p2), %v389_v5, 7  ;;  %v1552_v15 = vmov (!%p303_p2), 1983009808   ;;  %vm435_vm0 = vcmask (!%p303_p2), 1041544   ;;  %vm436_vm1 = vcmask (!%p303_p2), 1043458   ;;  %s1554_s24 = smov (!%p303_p2), 96  }
   0x8   : > { %1526 = vset.pattern.permute.xlu1 (!%p303_p2), %v1550_v1  ;;  %v388_v6 = vunpack.c.0.s8 (!%p303_p2), %v387_v4  ;;  %v423_v16 = vunpack.c.l.s4 (!%p303_p2), %v1552_v15  ;;  %vm437_vm2 = vmor (!%p303_p2), %vm436_vm1, %vm435_vm0  ;;  %vm438_vm3 = vcmask (!%p303_p2), 136196   ;;  %vm432_vm4 = vcmask (!%p303_p2), 138240   ;;  %s1555_s25 = smov (!%p303_p2), 112   ;;  %v1533_v40 = vld [vmem:[%s1753_s0] sm:$0xff] (!%p303_p2)   ;;  %s1556_s28 = smov (!%p303_p2), 110  }
   0x9   : > { %vm439_vm5 = vmor (!%p303_p2), %vm438_vm3, %vm437_vm2  ;;  %vm483_vm6 = vcmask (!%p303_p2), 1041408   ;;  %vm479_vm7 = vcmask (!%p303_p2), 31744   ;;  %s1557_s29 = smov (!%p303_p2), 111   ;;  %s1558_s11 = smov (!%p303_p2), 126   ;;  %v1225_v3 = vld [vmem:[%s1755_s2] sm:$0xff] (!%p303_p2)  ;;  %vm476_vm8 = vcmask (!%p303_p2), 916480  }
   0xa   : > { %v391_v8 = vsub.s32 (!%p303_p2), %v388_v6, %v1634_v7  ;;  %v424_v21 = vunpack.c.0.s8 (!%p303_p2), %v423_v16  ;;  %s1559_s12 = smov (!%p303_p2), 127   ;;  %s1560_s13 = smov (!%p303_p2), 94   ;;  %vm631_vm9 = vcmask (!%p303_p2), 785408   ;;  %vm725_vm10 = vcmask (!%p303_p2), 908288  }
   0xb   : > { %398 = vperm.xlu0 (!%p303_p2), %1525, %v395_v2   ;;  %s1561_s14 = smov (!%p303_p2), 95   ;;  %v1226_v2 = vld [vmem:[%s1755_s2 + $0x8] sm:$0xff] (!%p303_p2)  ;;  %vm972_vm11 = vcmask (!%p303_p2), 900096   ;;  %vm791_vm12 = vcmask (!%p303_p2), 1039360   ;;  %vm1038_vm13 = vcmask (!%p303_p2), 1031168   ;;  %vm878_vm14 = vcmask (!%p303_p2), 777216  }
   0xc   : > { %v1645_v24 = vsub.s32 (!%p303_p2), %v424_v21, %v1634_v7  ;;  %vm1125_vm15 = vcmask (!%p303_p2), 769024   ;;  %vm1247_vm0 = vcmask (!%p303_p2), 7168  }
   0xd   : > { %s1764_s10 = smov (!%p353_p3, %s1409_s10), 1 }
   0xe   : > { %s1474_s15 = sshll.u32 %s1764_s10, 2  ;;  %s1475_s19 = sshll.u32 %s1764_s10, 3 }
   0xf   : > { %s357_s18 = scalar_lea.vmem %s1756_s3, %s1474_s15  ;;  %s362_s22 = scalar_lea.vmem %s1759_s6, %s1475_s19 }
  0x10   : > { %v379_v9 = vld [vmem:[%s357_s18] sm:$0xf]  ;;  %s1736_s20 = sshll.u32 %s1764_s10, 4 }
  0x11   : > { %v380_v11 = vunpack.c.l.bf16 %v379_v9  ;;  %v410_v14 = vld [vmem:[%s362_s22] sm:$0xff] }
  0x12   : > { %v411_v20 = vmul.f32 -1.0, %v410_v14  ;;  %v1534_v14 = vld [vmem:[%s1753_s0 + $0x18] sm:$0xff]  }
  0x86   : > { %v385_v10 = vpop.permute.xlu0 %384 }
  0x87   : > { %v392_v12 = vrot.slane %v385_v10, %v391_v8 }
  0x89   : > { %v394_v17 = vmul.f32 %v392_v12, %v380_v11 }
  0x8a   : > { %v399_v13 = vpop.permute.xlu0 %398 }
  0x8b   : > { %v406_v18 = vrot.slane %v399_v13, %v391_v8 }
  0x8d   : > { %v408_v19 = vadd.f32 %v406_v18, %v394_v17 }
  0x8f   : > { %v409_v22 = vmax.f32 %v408_v19, 0.0 }
  0x91   : > { %v412_v23 = vadd.f32 %v411_v20, %v409_v22  ;;  %v1535_v20 = vld [vmem:[%s1753_s0 + $0x30] sm:$0xff]  }
  0x93   : > { %v415_v25 = vcombine.high %v412_v23, %v412_v23 }
  0x95   : > { %v1424_v26 = vpack.c.bf16 %v415_v25, %v412_v23 }
  0x97   : > { %v428_v27 = vrot.slane %v1424_v26, %v1645_v24  ;;  %v1536_v26 = vld [vmem:[%s1753_s0 + $0x20] sm:$0xff]  }
  0x99   : > { %429 = vrot.lane.b32.xlu1 %v428_v27, %s1553_s23  ;;  %s367_s23 = scalar_lea.vmem %s1760_s7, %s1736_s20 }
 0x10b   : > { %v430_v28 = vpop.permute.xlu1 %429 }
 0x10c   : > { %v431_v29 = vrot.slane %v430_v28, 6 }
 0x10e   : > { %v433_v30 = vsel %vm432_vm4, %v431_v29, %v430_v28 }
 0x10f   : > { %440 = vst.msk [vmem:[#allocation2] sm:$0x3f] %vm439_vm5, %v433_v30 }
 0x116   : > { %v599_v31 = vld [vmem:[#allocation2] sm:$0x3f] }
 0x117   : > { %v444_v32 = vld [vmem:[#allocation2] sm:$0x3f]  ;;  %v616_v33 = vrot.slane %v599_v31, %v1645_v24  ;;  %v609_v46 = vcombine.high %v599_v31, %v599_v31 }
 0x118   : > { %v461_v34 = vrot.slane %v444_v32, %v1645_v24  ;;  %v1431_v35 = vld.sshfl [vmem:[#allocation2] sm:$0x33 pattern:$0x76325410]  ;;  %v454_v43 = vcombine.high %v444_v32, %v444_v32  ;;  %v1537_v32 = vld [vmem:[%s1753_s0 + $0x28] sm:$0xff]  }
 0x119   : > { %v546_v36 = vcombine.high %v1431_v35, %v1431_v35  ;;  %v937_v37 = vld [vmem:[#allocation2] sm:$0x3f]  ;;  %625 = vrot.lane.b32.xlu0 %v616_v33, %s1554_s24  ;;  %v551_v39 = vsel %vm483_vm6, %v1431_v35, 0  ;;  %v623_v47 = vrot.slane %v609_v46, %v1645_v24  ;;  %v624_v48 = vcombine.high %v616_v33, %v616_v33  ;;  %v1539_v46 = vld [vmem:[%s1753_s0 + $0x10] sm:$0xff]  }
 0x11a   : > { %v690_v38 = vld [vmem:[#allocation2] sm:$0x3f]  ;;  %470 = vrot.lane.b32.xlu1 %v461_v34, %s1555_s25  ;;  %v957_v41 = vrot.slane %v937_v37, %v1645_v24  ;;  %v469_v44 = vcombine.high %v461_v34, %v461_v34  ;;  %v468_v45 = vrot.slane %v454_v43, %v1645_v24  ;;  %v950_v52 = vcombine.high %v937_v37, %v937_v37 }
 0x11b   : > { %1432 = vmatprep.subr.msk.bf16.mxu0 %vm483_vm6, %v546_v36  ;;  %v710_v42 = vrot.slane %v690_v38, %v1645_v24  ;;  %v703_v49 = vcombine.high %v690_v38, %v690_v38  ;;  %v1093_v55 = vld [vmem:[#allocation2] sm:$0x3f] }
 0x11c   : > { %557 = vmatpush1.bf16.msra.mxu0 %v551_v39  ;;  %v964_v53 = vrot.slane %v950_v52, %v1645_v24  ;;  %v965_v54 = vcombine.high %v957_v41, %v957_v41  ;;  %v846_v56 = vld [vmem:[#allocation2] sm:$0x3f]  ;;  %v1110_v57 = vrot.slane %v1093_v55, %v1645_v24  ;;  %v1103_v62 = vcombine.high %v1093_v55, %v1093_v55 }
 0x11d   : > { %966 = vrot.lane.b32.xlu0 %v957_v41, %s1556_s28  ;;  %v718_v50 = vcombine.high %v710_v42, %v710_v42  ;;  %v717_v51 = vrot.slane %v703_v49, %v1645_v24  ;;  %v863_v58 = vrot.slane %v846_v56, %v1645_v24  ;;  %v856_v59 = vcombine.high %v846_v56, %v846_v56 }
 0x11e   : > { %719 = vrot.lane.b32.xlu1 %v710_v42, %s1557_s29  ;;  %v1117_v63 = vrot.slane %v1103_v62, %v1645_v24  ;;  %v1118_v0 = vcombine.high %v1110_v57, %v1110_v57 }
 0x11f   : > { %1433 = vmatmul.mubr.msk.bf16.vlgmr.msra.gmra.mrb[0].mxu0 %vm479_vm7, %v1533_v40  ;;  %v871_v60 = vcombine.high %v863_v58, %v863_v58  ;;  %v870_v61 = vrot.slane %v856_v59, %v1645_v24  ;;  %v1538_v40 = vld [vmem:[%s1753_s0 + $0x8] sm:$0xff]   ;;  %v1541_v59 = vld [vmem:[%s1753_s0 + $0x40] sm:$0xff]  }
 0x120   : > { %675 = vmatprep.mubr.bf16.mxu0 %v1550_v1 }
 0x121   : > { %472 = vrot.lane.b32.xlu0 %v469_v44, %s1555_s25 }
 0x122   : > { %474 = vrot.lane.b32.xlu1 %v468_v45, %s1555_s25  ;;  %s372_s25 = scalar_lea.vmem %s1761_s8, %s1736_s20 }
 0x125   : > { %629 = vrot.lane.b32.xlu0 %v623_v47, %s1554_s24 }
 0x126   : > { %627 = vrot.lane.b32.xlu1 %v624_v48, %s1554_s24 }
 0x129   : > { %721 = vrot.lane.b32.xlu0 %v718_v50, %s1557_s29 }
 0x12a   : > { %723 = vrot.lane.b32.xlu1 %v717_v51, %s1557_s29 }
 0x12d   : > { %970 = vrot.lane.b32.xlu0 %v964_v53, %s1556_s28 }
 0x12e   : > { %968 = vrot.lane.b32.xlu1 %v965_v54, %s1556_s28  ;;  %s377_s28 = scalar_lea.vmem %s1762_s9, %s1736_s20 }
 0x131   : > { %1032 = vrot.lane.b32.xlu0 %v957_v41, %s1558_s11 }
 0x132   : > { %785 = vrot.lane.b32.xlu1 %v710_v42, %s1559_s12 }
 0x135   : > { %787 = vrot.lane.b32.xlu0 %v718_v50, %s1559_s12 }
 0x136   : > { %789 = vrot.lane.b32.xlu1 %v717_v51, %s1559_s12 }
 0x139   : > { %1036 = vrot.lane.b32.xlu0 %v964_v53, %s1558_s11 }
 0x13a   : > { %1034 = vrot.lane.b32.xlu1 %v965_v54, %s1558_s11  ;;  %v1540_v54 = vld [vmem:[%s1753_s0 + $0x38] sm:$0xff]  }
 0x13d   : > { %1119 = vrot.lane.b32.xlu0 %v1110_v57, %s1560_s13 }
 0x13e   : > { %872 = vrot.lane.b32.xlu1 %v863_v58, %s1561_s14 }
 0x141   : > { %874 = vrot.lane.b32.xlu0 %v871_v60, %s1561_s14 }
 0x142   : > { %876 = vrot.lane.b32.xlu1 %v870_v61, %s1561_s14 }
 0x145   : > { %1123 = vrot.lane.b32.xlu0 %v1117_v63, %s1560_s13 }
 0x146   : > { %1121 = vrot.lane.b32.xlu1 %v1118_v0, %s1560_s13 }
 0x149   : > { %1234 = vperm.xlu0 %1525, %v1226_v2  }
 0x14a   : > { %1229 = vperm.xlu1 %1526, %v1225_v3  }
 0x18b   : > { %v626_v4 = vpop.permute.xlu0 %625 }
 0x18c   : > { %v471_v5 = vpop.permute.xlu1 %470 }
 0x18f   : > { %v967_v6 = vpop.permute.xlu0 %966 }
 0x190   : > { %v720_v8 = vpop.permute.xlu1 %719 }
 0x193   : > { %v473_v9 = vpop.permute.xlu0 %472 }
 0x194   : > { %v475_v10 = vpop.permute.xlu1 %474  ;;  %v477_v12 = vsel %vm476_vm8, %v471_v5, %v473_v9 }
 0x195   : > { %v478_v11 = vsel %vm476_vm8, %v473_v9, %v475_v10  ;;  %v485_v13 = vsel %vm483_vm6, %v477_v12, 0  ;;  %v1190_v10 = vsub.s32 0, %v1634_v7  ;;  %v1194_v12 = vsub.s32 1, %v1634_v7 }
 0x196   : > { %1428 = vmatprep.subr.msk.bf16.mxu1 %vm483_vm6, %v478_v11  ;;  %v1184_v11 = vld [vmem:[%s1754_s1] ss:$2 sm:$0x3] }
 0x197   : > { %491 = vmatpush1.bf16.msra.mxu1 %v485_v13  ;;  %v630_v15 = vpop.permute.xlu0 %629  ;;  %v1191_v13 = vrot.slane %v1184_v11, %v1190_v10 }
 0x198   : > { %v628_v16 = vpop.permute.xlu1 %627 }
 0x199   : > { %v632_v17 = vsel %vm631_vm9, %v626_v4, %v628_v16  ;;  %v633_v18 = vsel %vm631_vm9, %v628_v16, %v630_v15  ;;  %v1469_v15 = vld [vmem:[%s1754_s1 + $0x1] ss:$2 sm:$0x3] }
 0x19a   : > { %v638_v19 = vsel %vm483_vm6, %v632_v17, 0  ;;  %1429 = vmatmul.mubr.msk.bf16.vlgmr.msra.gmra.mrb[0].mxu1 %vm479_vm7, %v1534_v14  ;;  %1437 = vmatprep.subr.msk.bf16.mxu0 %vm483_vm6, %v633_v18  ;;  %v1195_v14 = vrot.slane %v1184_v11, %v1194_v12 }
 0x19b   : > { %644 = vmatpush1.bf16.msra.mxu0 %v638_v19  ;;  %769 = vmatprep.mubr.bf16.mxu1 %v1550_v1  ;;  %v722_v21 = vpop.permute.xlu0 %721 }
 0x19c   : > { %v724_v22 = vpop.permute.xlu1 %723  ;;  %v726_v23 = vsel %vm725_vm10, %v720_v8, %v722_v21 }
 0x19d   : > { %v727_v24 = vsel %vm725_vm10, %v722_v21, %v724_v22  ;;  %v732_v25 = vsel %vm483_vm6, %v726_v23, 0  ;;  %v1210_v22 = vrot.slane %v1469_v15, %v1190_v10 }
 0x19e   : > { %1438 = vmatmul.mubr.msk.bf16.vlgmr.msra.gmra.mrb[0].mxu0 %vm479_vm7, %v1535_v20  ;;  %1444 = vmatprep.subr.msk.bf16.mxu1 %vm483_vm6, %v727_v24 }
 0x19f   : > { %738 = vmatpush1.bf16.msra.mxu1 %v732_v25  ;;  %1016 = vmatprep.mubr.bf16.mxu0 %v1550_v1  ;;  %v971_v27 = vpop.permute.xlu0 %970 }
 0x1a0   : > { %v969_v28 = vpop.permute.xlu1 %968 }
 0x1a1   : > { %v973_v29 = vsel %vm972_vm11, %v967_v6, %v969_v28  ;;  %v974_v30 = vsel %vm972_vm11, %v969_v28, %v971_v27 }
 0x1a2   : > { %v979_v31 = vsel %vm483_vm6, %v973_v29, 0  ;;  %1445 = vmatmul.mubr.msk.bf16.vlgmr.msra.gmra.mrb[4].mxu1 %vm479_vm7, %v1536_v26  ;;  %1459 = vmatprep.subr.msk.bf16.mxu0 %vm483_vm6, %v974_v30  ;;  %v1214_v26 = vrot.slane %v1469_v15, %v1194_v12 }
 0x1a3   : > { %985 = vmatpush1.bf16.msra.mxu0 %v979_v31  ;;  %835 = vmatprep.mubr.bf16.mxu1 %v1550_v1  ;;  %v1033_v33 = vpop.permute.xlu0 %1032 }
 0x1a4   : > { %v786_v34 = vpop.permute.xlu1 %785 }
 0x1a6   : > { %1460 = vmatmul.mubr.msk.bf16.vlgmr.msra.gmra.mrb[4].mxu0 %vm479_vm7, %v1537_v32 }
 0x1a7   : > { %1082 = vmatprep.mubr.bf16.mxu0 %v1550_v1  ;;  %v788_v35 = vpop.permute.xlu0 %787 }
 0x1a8   : > { %v790_v36 = vpop.permute.xlu1 %789  ;;  %v792_v37 = vsel %vm791_vm12, %v786_v34, %v788_v35 }
 0x1a9   : > { %v793_v38 = vsel %vm791_vm12, %v788_v35, %v790_v36  ;;  %v798_v39 = vsel %vm483_vm6, %v792_v37, 0 }
 0x1aa   : > { %1447 = vmatprep.subr.msk.bf16.mxu1 %vm483_vm6, %v793_v38 }
 0x1ab   : > { %804 = vmatpush1.bf16.msra.mxu1 %v798_v39  ;;  %v1037_v41 = vpop.permute.xlu0 %1036 }
 0x1ac   : > { %v1035_v42 = vpop.permute.xlu1 %1034 }
 0x1ad   : > { %v1039_v43 = vsel %vm1038_vm13, %v1033_v33, %v1035_v42  ;;  %v1040_v44 = vsel %vm1038_vm13, %v1035_v42, %v1037_v41 }
 0x1ae   : > { %v1045_v45 = vsel %vm483_vm6, %v1039_v43, 0  ;;  %1448 = vmatmul.mubr.msk.bf16.vlgmr.msra.gmra.mrb[4].mxu1 %vm479_vm7, %v1538_v40  ;;  %1462 = vmatprep.subr.msk.bf16.mxu0 %vm483_vm6, %v1040_v44 }
 0x1af   : > { %1051 = vmatpush1.bf16.msra.mxu0 %v1045_v45  ;;  %922 = vmatprep.mubr.bf16.mxu1 %v1550_v1  ;;  %v1120_v47 = vpop.permute.xlu0 %1119 }
 0x1b0   : > { %v873_v48 = vpop.permute.xlu1 %872 }
 0x1b2   : > { %1463 = vmatmul.mubr.msk.bf16.vlgmr.msra.gmra.mrb[4].mxu0 %vm479_vm7, %v1539_v46 }
 0x1b3   : > { %1169 = vmatprep.mubr.bf16.mxu0 %v1550_v1  ;;  %v875_v49 = vpop.permute.xlu0 %874 }
 0x1b4   : > { %v877_v50 = vpop.permute.xlu1 %876  ;;  %v879_v51 = vsel %vm878_vm14, %v873_v48, %v875_v49 }
 0x1b5   : > { %v880_v52 = vsel %vm878_vm14, %v875_v49, %v877_v50  ;;  %v885_v53 = vsel %vm483_vm6, %v879_v51, 0 }
 0x1b6   : > { %1452 = vmatprep.subr.msk.bf16.mxu1 %vm483_vm6, %v880_v52 }
 0x1b7   : > { %891 = vmatpush1.bf16.msra.mxu1 %v885_v53  ;;  %v1124_v55 = vpop.permute.xlu0 %1123 }
 0x1b8   : > { %v1122_v56 = vpop.permute.xlu1 %1121 }
 0x1b9   : > { %v1126_v57 = vsel %vm1125_vm15, %v1120_v47, %v1122_v56  ;;  %v1127_v58 = vsel %vm1125_vm15, %v1122_v56, %v1124_v55 }
 0x1ba   : > { %v1132_v1 = vsel %vm483_vm6, %v1126_v57, 0  ;;  %1453 = vmatmul.mubr.msk.bf16.vlgmr.msra.gmra.mrb[4].mxu1 %vm479_vm7, %v1540_v54  ;;  %1467 = vmatprep.subr.msk.bf16.mxu0 %vm483_vm6, %v1127_v58 }
 0x1bb   : > { %1138 = vmatpush1.bf16.msra.mxu0 %v1132_v1 }
 0x1be   : > { %1468 = vmatmul.mubr.msk.bf16.vlgmr.msra.gmra.mrb[4].mxu0 %vm479_vm7, %v1541_v59 }
 0x1c8   : > { %v1235_v42 = vpop.permute.xlu0 %1234 }
 0x1c9   : > { %v1230_v34 = vpop.permute.xlu1 %1229 }
 0x26d   : > { %v524_v60 = vpop.f32.mrb[0].mxu1 }
 0x26e   : > { %v526_v61 = vpop.f32.mrb[1].mxu1 }
 0x26f   : > { %v528_v62 = vpop.f32.mrb[2].mxu1 }
 0x270   : > { %v530_v63 = vpop.f32.mrb[3].mxu1 }
 0x271   : > { %v677_v0 = vpop.f32.mrb[0].mxu0 }
 0x272   : > { %v1481_v2 = vadd.f32 %v677_v0, %v524_v60  ;;  %v679_v3 = vpop.f32.mrb[1].mxu0 }
 0x273   : > { %v1482_v4 = vadd.f32 %v679_v3, %v526_v61  ;;  %v681_v5 = vpop.f32.mrb[2].mxu0 }
 0x274   : > { %v1483_v6 = vadd.f32 %v681_v5, %v528_v62  ;;  %v683_v8 = vpop.f32.mrb[3].mxu0  ;;  %v1198_v16 = vmul.f32 %v1481_v2, %v1191_v13 }
 0x275   : > { %v1484_v9 = vadd.f32 %v683_v8, %v530_v63  ;;  %v1199_v18 = vmul.f32 %v1482_v4, %v1195_v14 }
 0x276   : > { %v1200_v21 = vmul.f32 %v1483_v6, %v1191_v13 }
 0x277   : > { %v1201_v25 = vmul.f32 %v1484_v9, %v1195_v14 }
 0x28d   : > { %v924_v17 = vpop.f32.mrb[4].mxu1 }
 0x28e   : > { %v1202_v19 = vadd.f32 %v1198_v16, %v924_v17  ;;  %v926_v20 = vpop.f32.mrb[5].mxu1 }
 0x28f   : > { %v1203_v23 = vadd.f32 %v1199_v18, %v926_v20  ;;  %v928_v24 = vpop.f32.mrb[6].mxu1 }
 0x290   : > { %v1204_v27 = vadd.f32 %v1200_v21, %v928_v24  ;;  %v930_v7 = vpop.f32.mrb[7].mxu1 }
 0x291   : > { %v1205_v28 = vadd.f32 %v1201_v25, %v930_v7  ;;  %v1171_v29 = vpop.f32.mrb[4].mxu0 }
 0x292   : > { %v1217_v30 = vmul.f32 %v1210_v22, %v1171_v29  ;;  %v1173_v31 = vpop.f32.mrb[5].mxu0 }
 0x293   : > { %v1218_v32 = vmul.f32 %v1214_v26, %v1173_v31  ;;  %v1175_v33 = vpop.f32.mrb[6].mxu0 }
 0x294   : > { %v1221_v35 = vadd.f32 %v1217_v30, %v1202_v19  ;;  %v1219_v36 = vmul.f32 %v1210_v22, %v1175_v33  ;;  %v1177_v37 = vpop.f32.mrb[7].mxu0 }
 0x295   : > { %v1222_v38 = vadd.f32 %v1218_v32, %v1203_v23  ;;  %v1220_v39 = vmul.f32 %v1214_v26, %v1177_v37 }
 0x296   : > { %v1223_v40 = vadd.f32 %v1219_v36, %v1204_v27  ;;  %v1237_v41 = vadd.f32 %v1230_v34, %v1221_v35 }
 0x297   : > { %v1224_v43 = vadd.f32 %v1220_v39, %v1205_v28  ;;  %v1238_v44 = vadd.f32 %v1230_v34, %v1222_v38 }
 0x298   : > { %v1239_v45 = vadd.f32 %v1235_v42, %v1223_v40  ;;  %v1250_v46 = vmul.f32 %v1237_v41, %v1237_v41 }
 0x299   : > { %v1240_v47 = vadd.f32 %v1235_v42, %v1224_v43  ;;  %v1479_v48 = vpack.c.bf16 %v1238_v44, %v1237_v41  ;;  %v1241_v49 = vadd.f32 %v1238_v44, %v1237_v41  ;;  %v1251_v50 = vmul.f32 %v1238_v44, %v1238_v44 }
 0x29a   : > { %v1252_v51 = vmul.f32 %v1239_v45, %v1239_v45 }
 0x29b   : > { %v1480_v52 = vpack.c.bf16 %v1240_v47, %v1239_v45  ;;  %1242 = vadd.xlane.f32.xlu1 %v1241_v49  ;;  %v1244_v53 = vadd.f32 %v1240_v47, %v1239_v45  ;;  %v1253_v54 = vmul.f32 %v1240_v47, %v1240_v47  ;;  %v1254_v55 = vadd.f32 %v1251_v50, %v1250_v46 }
 0x29c   : > { %1274 = vst [vmem:[%s367_s23] sm:$0xff] %v1479_v48 }
 0x29d   : > { %1245 = vadd.xlane.f32.xlu0 %v1244_v53  ;;  %v1257_v56 = vadd.f32 %v1253_v54, %v1252_v51  ;;  %1275 = vst [vmem:[%s367_s23 + $0x8] sm:$0xff] %v1480_v52 }
 0x29f   : > { %1258 = vadd.xlane.f32.xlu1 %v1257_v56 }
 0x2a1   : > { %1255 = vadd.xlane.f32.xlu0 %v1254_v55 }
 0x328   : > { %v1243_v57 = vpop.xlane.xlu1 %1242 }
 0x329   : > { %1248 = vst.msk [vmem:[%s372_s25] sm:$0xff] %vm1247_vm0, %v1243_v57 }
 0x32a   : > { %v1246_v58 = vpop.xlane.xlu0 %1245 }
 0x32b   : > { %1249 = vst.msk [vmem:[%s372_s25 + $0x8] sm:$0xff] %vm1247_vm0, %v1246_v58 }
 0x32c   : > { %v1259_v1 = vpop.xlane.xlu1 %1258 }
 0x32d   : > { %1261 = vst.msk [vmem:[%s377_s28 + $0x8] sm:$0xff] %vm1247_vm0, %v1259_v1 }
 0x32e   : > { %v1256_v59 = vpop.xlane.xlu0 %1255 }
 0x32f   : > { %1260 = vst.msk [vmem:[%s377_s28] sm:$0xff] %vm1247_vm0, %v1256_v59 }
 0x330 PF: > { %s20_s30 = sadd.s32 1, %s1548_s30  }
 0x331   : > { %p17_p4 = scmp.ge.s32.totalorder %s20_s30, 4  }
 0x333   :  { %19 = sbr.rel (!%p17_p4) target bundleno = 1 (0x1), region = 114 }

// kernel: db_upsample.7
= control target key start
LH: loop header
LB: loop body
LE: loop exit
PB: predicated region body
PF: predicated region fallthrough
CT: control target
= control target key end

     0   :  { %s502_s21 = smov 0   ;;  %s550_s0 = inlined_call_operand.vmem [shape: bf16[2,16,256], index: 0, kind: input, shape index: {}]   ;;  %s551_s1 = inlined_call_operand.vmem [shape: f32[16,1], index: 1, kind: input, shape index: {}]   ;;  %s552_s2 = inlined_call_operand.vmem [shape: f32[16,1], index: 2, kind: input, shape index: {}]   ;;  %s553_s3 = inlined_call_operand.vmem [shape: bf16[2,16,256], index: 3, kind: input, shape index: {}]   ;;  %s554_s4 = inlined_call_operand.vmem [shape: f32[16,1], index: 4, kind: input, shape index: {}]   ;;  %s555_s5 = inlined_call_operand.vmem [shape: f32[16,1], index: 5, kind: input, shape index: {}]   ;;  %s556_s6 = inlined_call_operand.vmem [shape: f32[2,16,256], index: 6, kind: output, shape index: {}]  }
   0x1 LB: > { %s431_s22 = sadd.s32 4294967295, %s464_s21   ;;  %p435_p0 = scmp.ge.s32.totalorder %s464_s21, 1  ;;  %s464_s21 = sphi %s502_s21, %s16_s21  }
   0x2   : > { %p222_p1 = scmp.lt.s32.totalorder %s464_s21, 3 }
   0x4   : > { %p223_p2 = pnand %p435_p0, %p222_p1 }
   0x5   : > { %v320_v0 = vld [vmem:[%s554_s4] sm:$0xff] (!%p223_p2)  ;;  %v466_v2 = vmov (!%p223_p2), 0   ;;  %v321_v3 = vld [vmem:[%s554_s4 + $0x8] sm:$0xff] (!%p223_p2)  ;;  %p257_p3 = scmp.lt.s32.totalorder (!%p223_p2), %s431_s22, 1 }
   0x6   : > { %226 = sbr.rel (%p223_p2) target bundleno = 155 (0x9b), region = 44  ;;  %v278_v1 = vld [vmem:[%s551_s1] sm:$0xff] (!%p223_p2)  ;;  %457 = vset.pattern.permute.xlu1 (!%p223_p2), %v466_v2  ;;  %456 = vset.pattern.permute.xlu0 (!%p223_p2), %v466_v2  ;;  %v279_v4 = vld [vmem:[%s551_s1 + $0x8] sm:$0xff] (!%p223_p2) }
   0x7   : > { %324 = vperm.xlu1 (!%p223_p2), %457, %v320_v0   ;;  %282 = vperm.xlu0 (!%p223_p2), %456, %v278_v1   ;;  %v295_v5 = vld [vmem:[%s552_s2 + $0x8] sm:$0xff] (!%p223_p2)  ;;  %v294_v6 = vld [vmem:[%s552_s2] sm:$0xff] (!%p223_p2) }
   0x8   : > { %v337_v7 = vld [vmem:[%s555_s5 + $0x8] sm:$0xff] (!%p223_p2)  ;;  %v336_v8 = vld [vmem:[%s555_s5] sm:$0xff] (!%p223_p2) }
   0xb   : > { %329 = vperm.xlu1 (!%p223_p2), %457, %v321_v3   ;;  %287 = vperm.xlu0 (!%p223_p2), %456, %v279_v4  }
   0xd   : > { %s558_s22 = smov (!%p257_p3, %s431_s22), 1 }
   0xe   : > { %s444_s15 = sshll.u32 %s558_s22, 4  ;;  %s446_s24 = sshll.u32 %s558_s22, 5 }
   0xf   : > { %303 = vperm.xlu1 %457, %v295_v5   ;;  %298 = vperm.xlu0 %456, %v294_v6   ;;  %s261_s18 = scalar_lea.vmem %s550_s0, %s444_s15  ;;  %s266_s23 = scalar_lea.vmem %s553_s3, %s444_s15 }
  0x10   : > { %v272_v11 = vld [vmem:[%s261_s18] sm:$0xff]  ;;  %v273_v12 = vld [vmem:[%s261_s18 + $0x8] sm:$0xff]  ;;  %s271_s27 = scalar_lea.vmem %s556_s6, %s446_s24 }
  0x11   : > { %v314_v13 = vld [vmem:[%s266_s23] sm:$0xff]  ;;  %v274_v14 = vunpack.c.l.bf16 %v272_v11  ;;  %v275_v15 = vunpack.c.h.bf16 %v272_v11  ;;  %v315_v17 = vld [vmem:[%s266_s23 + $0x8] sm:$0xff]  ;;  %v276_v19 = vunpack.c.l.bf16 %v273_v12  ;;  %v277_v20 = vunpack.c.h.bf16 %v273_v12 }
  0x12   : > { %v316_v21 = vunpack.c.l.bf16 %v314_v13  ;;  %v317_v22 = vunpack.c.h.bf16 %v314_v13  ;;  %v318_v23 = vunpack.c.l.bf16 %v315_v17  ;;  %v319_v24 = vunpack.c.h.bf16 %v315_v17 }
  0x13   : > { %345 = vperm.xlu1 %457, %v337_v7   ;;  %340 = vperm.xlu0 %456, %v336_v8  }
  0x86   : > { %v325_v9 = vpop.permute.xlu1 %324  ;;  %v283_v10 = vpop.permute.xlu0 %282 }
  0x87   : > { %v290_v25 = vmul.f32 %v283_v10, %v274_v14  ;;  %v291_v26 = vmul.f32 %v283_v10, %v275_v15  ;;  %v332_v35 = vmul.f32 %v325_v9, %v316_v21  ;;  %v333_v36 = vmul.f32 %v325_v9, %v317_v22 }
  0x8a   : > { %v330_v16 = vpop.permute.xlu1 %329  ;;  %v288_v18 = vpop.permute.xlu0 %287 }
  0x8b   : > { %v292_v27 = vmul.f32 %v288_v18, %v276_v19  ;;  %v293_v28 = vmul.f32 %v288_v18, %v277_v20  ;;  %v334_v37 = vmul.f32 %v330_v16, %v318_v23  ;;  %v335_v38 = vmul.f32 %v330_v16, %v319_v24 }
  0x8e   : > { %v304_v29 = vpop.permute.xlu1 %303  ;;  %v299_v30 = vpop.permute.xlu0 %298 }
  0x8f   : > { %v308_v31 = vadd.f32 %v304_v29, %v292_v27  ;;  %v309_v32 = vadd.f32 %v304_v29, %v293_v28  ;;  %v306_v33 = vadd.f32 %v299_v30, %v290_v25  ;;  %v307_v34 = vadd.f32 %v299_v30, %v291_v26 }
  0x91   : > { %v312_v45 = vmax.f32 %v308_v31, 0.0  ;;  %v313_v46 = vmax.f32 %v309_v32, 0.0  ;;  %v310_v47 = vmax.f32 %v306_v33, 0.0  ;;  %v311_v48 = vmax.f32 %v307_v34, 0.0 }
  0x92   : > { %v346_v39 = vpop.permute.xlu1 %345  ;;  %v341_v40 = vpop.permute.xlu0 %340 }
  0x93   : > { %v350_v41 = vadd.f32 %v346_v39, %v334_v37  ;;  %v351_v42 = vadd.f32 %v346_v39, %v335_v38  ;;  %v348_v43 = vadd.f32 %v341_v40, %v332_v35  ;;  %v349_v44 = vadd.f32 %v341_v40, %v333_v36 }
  0x95   : > { %v354_v49 = vmax.f32 %v350_v41, 0.0  ;;  %v355_v50 = vmax.f32 %v351_v42, 0.0  ;;  %v352_v51 = vmax.f32 %v348_v43, 0.0  ;;  %v353_v52 = vmax.f32 %v349_v44, 0.0 }
  0x97   : > { %v358_v53 = vadd.f32 %v354_v49, %v312_v45  ;;  %v359_v54 = vadd.f32 %v355_v50, %v313_v46  ;;  %v356_v55 = vadd.f32 %v352_v51, %v310_v47  ;;  %v357_v56 = vadd.f32 %v353_v52, %v311_v48 }
  0x99   : > { %362 = vst [vmem:[%s271_s27 + $0x10] sm:$0xff] %v358_v53  ;;  %363 = vst [vmem:[%s271_s27 + $0x18] sm:$0xff] %v359_v54 }
  0x9a   : > { %360 = vst [vmem:[%s271_s27] sm:$0xff] %v356_v55  ;;  %361 = vst [vmem:[%s271_s27 + $0x8] sm:$0xff] %v357_v56 }
  0x9b PF: > { %s16_s21 = sadd.s32 1, %s464_s21  }
  0x9c   : > { %p13_p4 = scmp.ge.s32.totalorder %s16_s21, 4  }
  0x9e   :  { %15 = sbr.rel (!%p13_p4) target bundleno = 1 (0x1), region = 77 }

</bundles_post_ra>
